<compile_context>
chip_gen: v6e
topology: v6e:2x2x1
jax: 0.10.0
libtpu: 0.0.40
codegen_flags: <defaults>
</compile_context>

<pallas_src>
import jax
import jax.numpy as jnp
import numpy as np
from jax import lax
from jax.experimental import pallas as pl
from jax.experimental.pallas import tpu as pltpu

# ---- small config consistent with the module ----
B = 2        # batch
S = 8        # encoder sequence length
H = 32       # config.hidden_dim
L = 2        # config.num_layers
V = 64       # tokenizer.vocab_size
PAD = 0      # tokenizer.pad_token_id
IN = 2 * H   # GRU layer-0 input size (use_attention=True -> hidden*2)

_F32 = jnp.float32


# ---------------------------------------------------------------------------
# Fused multi-step decode kernel. One grid iteration == one decode step.
# ---------------------------------------------------------------------------
def decode_kernel(
    tok_ref,                                             # scalar-prefetch: (B,) int32 start tokens
    hidden_ref, enc_ref, mask_ref, emb_ref,              # data
    w_dim_ref, b_dim_ref, w_enc_ref, b_enc_ref,          # attention encoder side
    w_dec1_ref, b_dec1_ref, w_dec2_ref, b_dec2_ref,      # attention decoder side
    w_score_ref, b_score_ref,                            # score_wts
    w_gru0_ref, b_gru0_ref, w_gru1_ref, b_gru1_ref,      # packed GRU layers
    w_fc_ref, b_fc_ref,                                  # fc
    logits_ref, hn_ref, score_ref,                       # outputs
    enc_proj_sc, s1_sc, h_sc, onehot_sc,                 # VMEM scratch (persist across steps)
):
    step = pl.program_id(0)

    # -------- step-invariant work + state init (runs once) --------
    @pl.when(step == 0)
    def _init():
        enc_r = jnp.maximum(enc_ref[...], 0.0)                            # relu(enc_output)
        enc2 = enc_r.reshape(B * S, 2 * H)
        ep = jnp.dot(enc2, w_dim_ref[...],
                     preferred_element_type=_F32) + b_dim_ref[...]        # enc_dim_changer
        enc_proj_sc[...] = ep.reshape(B, S, H)
        s1_sc[...] = (jnp.dot(jnp.maximum(ep, 0.0), w_enc_ref[...],
                              preferred_element_type=_F32)
                      + b_enc_ref[...]).reshape(B, S, H)                  # enc_wts(relu(.))
        h_sc[...] = hidden_ref[...]
        # one-hot of the start tokens (scalar SMEM read broadcast against a lane iota)
        lane1 = lax.broadcasted_iota(jnp.int32, (1, V), 1)
        rows = [(lane1 == tok_ref[b]).astype(_F32) for b in range(B)]
        onehot_sc[...] = jnp.concatenate(rows, axis=0)                    # (B, V)

    # -------- embedding lookup: one-hot @ table (MXU) --------
    x_emb = jnp.dot(onehot_sc[...], emb_ref[...], preferred_element_type=_F32)   # (B, H)

    enc_proj = enc_proj_sc[...]       # (B, S, H)  enc_dim_changer output (not relu'd, as in torch)
    s1 = s1_sc[...]                   # (B, S, H)
    mask = mask_ref[...]              # (B, S)

    # -------- attention: decoder-side projection + masked softmax + context --------
    dec_h = jnp.maximum(h_sc[L - 1], 0.0)                                 # relu(hidden[-1])
    d1 = jnp.maximum(
        jnp.dot(dec_h, w_dec1_ref[...], preferred_element_type=_F32) + b_dec1_ref[...], 0.0)
    d2 = jnp.dot(d1, w_dec2_ref[...], preferred_element_type=_F32) + b_dec2_ref[...]   # (B, H)

    score_pre = jnp.tanh(s1 + d2[:, None, :])                             # (B, S, H)
    sc = jnp.sum(score_pre * w_score_ref[...][None, :, :], axis=-1) + b_score_ref[...] # (B, S)
    sc = jnp.where(mask == 0.0, -jnp.inf, sc)                             # masked_fill(-inf)
    m = jnp.max(sc, axis=1, keepdims=True)
    e = jnp.exp(sc - m)
    attn = e * pl.reciprocal(jnp.sum(e, axis=1, keepdims=True), approx=False)  # softmax over S

    # context = bmm(enc_proj^T, attn) as one batched MXU matmul
    ctx = jnp.einsum("bqs,bsh->bqh", attn[:, None, :], enc_proj,
                     preferred_element_type=_F32).reshape(B, H)           # (B, H)

    # -------- GRU (2 layers, one time step), packed gi/gh matmul per layer --------
    def gru_cell(x_in, h_prev, w_ref, b_ref):
        xh = jnp.concatenate([x_in, h_prev], axis=-1)
        g = jnp.dot(xh, w_ref[...], preferred_element_type=_F32) + b_ref[...]   # (B, 4H)
        r = jax.nn.sigmoid(g[:, 0:H])
        z = jax.nn.sigmoid(g[:, H:2 * H])
        n = jnp.tanh(g[:, 2 * H:3 * H] + r * g[:, 3 * H:4 * H])
        return (1.0 - z) * n + z * h_prev

    x_in0 = jnp.concatenate([x_emb, ctx], axis=-1)                        # cat(embedded, ctx)
    h0_new = gru_cell(x_in0, h_sc[0], w_gru0_ref, b_gru0_ref)
    h1_new = gru_cell(h0_new, h_sc[1], w_gru1_ref, b_gru1_ref)

    # -------- fc(relu(gru_out)) --------
    logits = jnp.dot(jnp.maximum(h1_new, 0.0), w_fc_ref[...],
                     preferred_element_type=_F32) + b_fc_ref[...]         # (B, V)

    new_h = jnp.stack([h0_new, h1_new], axis=0)                           # (L, B, H)
    h_sc[...] = new_h
    hn_ref[...] = new_h
    logits_ref[0] = logits
    score_ref[0] = attn

    # -------- greedy argmax -> next-token one-hot (all vector ops, stays in VMEM) --------
    lane = lax.broadcasted_iota(jnp.int32, (B, V), 1)
    mx = jnp.max(logits, axis=-1, keepdims=True)
    first_idx = jnp.min(jnp.where(logits == mx, lane, V), axis=-1, keepdims=True)
    onehot_sc[...] = (lane == first_idx).astype(_F32)


# ---------------------------------------------------------------------------
# pallas_call builder / glue
# ---------------------------------------------------------------------------
def _full_spec(shape):
    nd = len(shape)
    return pl.BlockSpec(shape, lambda t, tok, nd=nd: (0,) * nd)


_IN_SHAPES = [
    (L, B, H), (B, S, 2 * H), (B, S), (V, H),           # hidden, enc_output, mask, embedding
    (2 * H, H), (1, H), (H, H), (1, H),                 # enc_dim_changer, enc_wts
    (H, H), (1, H), (H, H), (1, H),                     # dec_wts[0], dec_wts[2]
    (1, H), (1, 1),                                     # score_wts
    (IN + H, 4 * H), (1, 4 * H), (2 * H, 4 * H), (1, 4 * H),   # packed GRU layers 0 / 1
    (H, V), (1, V),                                     # fc
]


def _build_decode_call(T):
    grid_spec = pltpu.PrefetchScalarGridSpec(
        num_scalar_prefetch=1,
        grid=(T,),
        in_specs=[_full_spec(s) for s in _IN_SHAPES],
        out_specs=[
            pl.BlockSpec((1, B, V), lambda t, tok: (t, 0, 0)),
            pl.BlockSpec((L, B, H), lambda t, tok: (0, 0, 0)),
            pl.BlockSpec((1, B, S), lambda t, tok: (t, 0, 0)),
        ],
        scratch_shapes=[
            pltpu.VMEM((B, S, H), _F32),   # enc_proj
            pltpu.VMEM((B, S, H), _F32),   # s1
            pltpu.VMEM((L, B, H), _F32),   # carried hidden state
            pltpu.VMEM((B, V), _F32),      # carried next-token one-hot
        ],
    )
    return pl.pallas_call(
        decode_kernel,
        out_shape=(jax.ShapeDtypeStruct((T, B, V), _F32),     # logits per step
                   jax.ShapeDtypeStruct((L, B, H), _F32),     # final hidden state
                   jax.ShapeDtypeStruct((T, B, S), _F32)),    # attention weights per step
        grid_spec=grid_spec,
        compiler_params=pltpu.CompilerParams(dimension_semantics=("arbitrary",)),
    )


def _run_decode(start_tokens, hidden, enc_output, mask_f32, p, T):
    call = _build_decode_call(T)
    return call(start_tokens, hidden, enc_output, mask_f32, p["embedding"],
                p["w_dim"], p["b_dim"], p["w_enc"], p["b_enc"],
                p["w_dec1"], p["b_dec1"], p["w_dec2"], p["b_dec2"],
                p["w_score"], p["b_score"],
                p["w_gru0"], p["b_gru0"], p["w_gru1"], p["b_gru1"],
                p["w_fc"], p["b_fc"])


def decoder_forward(tokens, hidden, enc_output, mask, p):
    """Single decode step matching Decoder.forward.
    tokens: (B,1) int32 -> (logits (B,1,V), hn (L,B,H), score (B,S,1))."""
    logits, hn, score = _run_decode(tokens[:, 0].astype(jnp.int32), hidden, enc_output,
                                    mask.astype(_F32), p, 1)
    return jnp.transpose(logits, (1, 0, 2)), hn, jnp.transpose(score, (1, 2, 0))


def greedy_decode(tokens, hidden, enc_output, mask, p, n_steps):
    """Multi-step greedy decode (Decoder.batch_inference loop) fused into ONE kernel launch.
    Returns (logits (B,T,V), hn (L,B,H), scores (B,S,T))."""
    logits, hn, scores = _run_decode(tokens[:, 0].astype(jnp.int32), hidden, enc_output,
                                     mask.astype(_F32), p, n_steps)
    return jnp.transpose(logits, (1, 0, 2)), hn, jnp.transpose(scores, (1, 2, 0))


# ---------------------------------------------------------------------------
# One-time glue-side weight packing
# ---------------------------------------------------------------------------
def pack_gru_layer(w_ih, w_hh, b_ih, b_hh):
    """Build the (in+H, 4H) block weight fusing the gi/gh pair of one GRU layer into a
    single matmul. Columns: [r combined, z combined, gi_n, gh_n]."""
    in_size = w_ih.shape[0]
    top = jnp.concatenate(
        [w_ih[:, 0:2 * H], w_ih[:, 2 * H:3 * H], jnp.zeros((in_size, H), _F32)], axis=1)
    bot = jnp.concatenate(
        [w_hh[:, 0:2 * H], jnp.zeros((H, H), _F32), w_hh[:, 2 * H:3 * H]], axis=1)
    w = jnp.concatenate([top, bot], axis=0)                              # (in+H, 4H)
    b = jnp.concatenate(
        [b_ih[:, 0:2 * H] + b_hh[:, 0:2 * H], b_ih[:, 2 * H:3 * H], b_hh[:, 2 * H:3 * H]],
        axis=1)                                                          # (1, 4H)
    return w, b


def prepare_decoder_params(p):
    w0, b0 = pack_gru_layer(p["w_ih0"], p["w_hh0"], p["b_ih0"], p["b_hh0"])
    w1, b1 = pack_gru_layer(p["w_ih1"], p["w_hh1"], p["b_ih1"], p["b_hh1"])
    return dict(p, w_gru0=w0, b_gru0=b0, w_gru1=w1, b_gru1=b1)


# ---------------- deterministic parameter init ----------------
def make_params(key):
    def lin(k, fan_in, fan_out):
        bound = 1.0 / np.sqrt(fan_in)
        kw, kb = jax.random.split(k)
        w = jax.random.uniform(kw, (fan_in, fan_out), _F32, -bound, bound)
        b = jax.random.uniform(kb, (1, fan_out), _F32, -bound, bound)
        return w, b

    ks = jax.random.split(key, 12)
    p = {}
    emb = 0.1 * jax.random.normal(ks[0], (V, H), _F32)
    p["embedding"] = emb.at[PAD].set(0.0)                 # padding_idx row zeroed
    p["w_dim"], p["b_dim"] = lin(ks[1], 2 * H, H)         # enc_dim_changer
    p["w_enc"], p["b_enc"] = lin(ks[2], H, H)             # enc_wts
    p["w_dec1"], p["b_dec1"] = lin(ks[3], H, H)           # dec_wts[0]
    p["w_dec2"], p["b_dec2"] = lin(ks[4], H, H)           # dec_wts[2]
    ws, bs = lin(ks[5], H, 1)                             # score_wts
    p["w_score"], p["b_score"] = ws.T, bs                 # stored (1, H), (1, 1)
    p["w_ih0"], p["b_ih0"] = lin(ks[6], IN, 3 * H)        # GRU layer 0
    p["w_hh0"], p["b_hh0"] = lin(ks[7], H, 3 * H)
    p["w_ih1"], p["b_ih1"] = lin(ks[8], H, 3 * H)         # GRU layer 1
    p["w_hh1"], p["b_hh1"] = lin(ks[9], H, 3 * H)
    p["w_fc"], p["b_fc"] = lin(ks[10], H, V)              # fc
    return p


# ---------------- pure-JAX reference (PyTorch semantics) ----------------
def ref_forward(tokens, hidden, enc_output, mask, p):
    x = p["embedding"][tokens[:, 0]]                                  # (B, H)
    enc_r = jax.nn.relu(enc_output)
    enc_proj = enc_r @ p["w_dim"] + p["b_dim"]                        # (B, S, H)
    s1 = jax.nn.relu(enc_proj) @ p["w_enc"] + p["b_enc"]
    dec_h = jax.nn.relu(hidden[-1])
    d = jax.nn.relu(dec_h @ p["w_dec1"] + p["b_dec1"]) @ p["w_dec2"] + p["b_dec2"]
    score = jnp.tanh(s1 + d[:, None, :])
    score = jnp.einsum("bsh,h->bs", score, p["w_score"][0]) + p["b_score"][0, 0]
    score = jnp.where(mask == 0.0, -jnp.inf, score)
    score = jax.nn.softmax(score, axis=1)                             # (B, S)
    ctx = jnp.einsum("bsh,bs->bh", enc_proj, score)                   # (B, H)

    def gru_cell(x_in, h, w_ih, w_hh, b_ih, b_hh):
        gi = x_in @ w_ih + b_ih
        gh = h @ w_hh + b_hh
        r = jax.nn.sigmoid(gi[:, :H] + gh[:, :H])
        z = jax.nn.sigmoid(gi[:, H:2 * H] + gh[:, H:2 * H])
        n = jnp.tanh(gi[:, 2 * H:] + r * gh[:, 2 * H:])
        return (1 - z) * n + z * h

    x_in0 = jnp.concatenate([x, ctx], axis=-1)
    h0 = gru_cell(x_in0, hidden[0], p["w_ih0"], p["w_hh0"], p["b_ih0"], p["b_hh0"])
    h1 = gru_cell(h0, hidden[1], p["w_ih1"], p["w_hh1"], p["b_ih1"], p["b_hh1"])
    logits = jax.nn.relu(h1) @ p["w_fc"] + p["b_fc"]
    return logits[:, None, :], jnp.stack([h0, h1]), score[:, :, None]


def ref_greedy(tokens, hidden, enc_output, mask, p, n_steps):
    outs = []
    for _ in range(n_steps):
        logits, hidden, _ = ref_forward(tokens, hidden, enc_output, mask, p)
        outs.append(logits[:, 0, :])
        tokens = jnp.argmax(logits[:, 0, :], axis=-1)[:, None].astype(jnp.int32)
    return jnp.stack(outs, axis=1), hidden


if __name__ == "__main__":
    key = jax.random.PRNGKey(0)
    kp, k1, k2, k3 = jax.random.split(key, 4)
    params = prepare_decoder_params(make_params(kp))

    tokens = jax.random.randint(k1, (B, 1), 1, V).astype(jnp.int32)   # decoder input step
    hidden = jax.random.normal(k2, (L, B, H), _F32)
    enc_output = jax.random.normal(k3, (B, S, 2 * H), _F32)
    mask = jnp.ones((B, S), _F32).at[:, S - 2:].set(0.0)              # last 2 positions padded

    # ---- single-step check (matches Decoder.forward) ----
    logits, hn, score = decoder_forward(tokens, hidden, enc_output, mask, params)
    jax.block_until_ready((logits, hn, score))

    rl, rh, rs = ref_forward(tokens, hidden, enc_output, mask, params)
    np.testing.assert_allclose(np.asarray(logits), np.asarray(rl), rtol=2e-2, atol=2e-2)
    np.testing.assert_allclose(np.asarray(hn), np.asarray(rh), rtol=2e-2, atol=2e-2)
    np.testing.assert_allclose(np.asarray(score), np.asarray(rs), rtol=2e-2, atol=2e-2)

    # ---- fused multi-step greedy decode (one kernel launch for all steps) ----
    T = 3
    k_logits, k_hid, _ = greedy_decode(tokens, hidden, enc_output, mask, params, T)
    jax.block_until_ready((k_logits, k_hid))
    r_logits, r_hid = ref_greedy(tokens, hidden, enc_output, mask, params, T)
    np.testing.assert_allclose(np.asarray(k_logits), np.asarray(r_logits), rtol=2e-2, atol=2e-2)
    np.testing.assert_allclose(np.asarray(k_hid), np.asarray(r_hid), rtol=2e-2, atol=2e-2)

    print("KERNEL_OK")
</pallas_src>

<mosaic_0001>
module attributes {stable_mosaic.version = 11 : i64} {
  func.func @decode_kernel(%arg0: i32, %arg1: memref<2xi32, #tpu.memory_space<smem>>, %arg2: memref<2x2x32xf32, #tpu.memory_space<vmem>>, %arg3: memref<2x8x64xf32, #tpu.memory_space<vmem>>, %arg4: memref<2x8xf32, #tpu.memory_space<vmem>>, %arg5: memref<64x32xf32, #tpu.memory_space<vmem>>, %arg6: memref<64x32xf32, #tpu.memory_space<vmem>>, %arg7: memref<1x32xf32, #tpu.memory_space<vmem>>, %arg8: memref<32x32xf32, #tpu.memory_space<vmem>>, %arg9: memref<1x32xf32, #tpu.memory_space<vmem>>, %arg10: memref<32x32xf32, #tpu.memory_space<vmem>>, %arg11: memref<1x32xf32, #tpu.memory_space<vmem>>, %arg12: memref<32x32xf32, #tpu.memory_space<vmem>>, %arg13: memref<1x32xf32, #tpu.memory_space<vmem>>, %arg14: memref<1x32xf32, #tpu.memory_space<vmem>>, %arg15: memref<1x1xf32, #tpu.memory_space<vmem>>, %arg16: memref<96x128xf32, #tpu.memory_space<vmem>>, %arg17: memref<1x128xf32, #tpu.memory_space<vmem>>, %arg18: memref<64x128xf32, #tpu.memory_space<vmem>>, %arg19: memref<1x128xf32, #tpu.memory_space<vmem>>, %arg20: memref<32x64xf32, #tpu.memory_space<vmem>>, %arg21: memref<1x64xf32, #tpu.memory_space<vmem>>, %arg22: memref<1x2x64xf32, #tpu.memory_space<vmem>>, %arg23: memref<2x2x32xf32, #tpu.memory_space<vmem>>, %arg24: memref<1x2x8xf32, #tpu.memory_space<vmem>>, %arg25: memref<2x8x32xf32, #tpu.memory_space<vmem>>, %arg26: memref<2x8x32xf32, #tpu.memory_space<vmem>>, %arg27: memref<2x2x32xf32, #tpu.memory_space<vmem>>, %arg28: memref<2x64xf32, #tpu.memory_space<vmem>>) attributes {dimension_semantics = [#tpu.dimension_semantics<arbitrary>], iteration_bounds = array<i64: 1>, scalar_prefetch = 1 : i64, scratch_operands = 4 : i64, tpu.core_type = #tpu.core_type<tc>, window_params = [{pipeline_mode = #tpu.pipeline_mode<synchronous>, transform_indices = @transform_0, window_bounds = array<i64: 2, 2, 32>}, {pipeline_mode = #tpu.pipeline_mode<synchronous>, transform_indices = @transform_1, window_bounds = array<i64: 2, 8, 64>}, {pipeline_mode = #tpu.pipeline_mode<synchronous>, transform_indices = @transform_2, window_bounds = array<i64: 2, 8>}, {pipeline_mode = #tpu.pipeline_mode<synchronous>, transform_indices = @transform_3, window_bounds = array<i64: 64, 32>}, {pipeline_mode = #tpu.pipeline_mode<synchronous>, transform_indices = @transform_4, window_bounds = array<i64: 64, 32>}, {pipeline_mode = #tpu.pipeline_mode<synchronous>, transform_indices = @transform_5, window_bounds = array<i64: 1, 32>}, {pipeline_mode = #tpu.pipeline_mode<synchronous>, transform_indices = @transform_6, window_bounds = array<i64: 32, 32>}, {pipeline_mode = #tpu.pipeline_mode<synchronous>, transform_indices = @transform_7, window_bounds = array<i64: 1, 32>}, {pipeline_mode = #tpu.pipeline_mode<synchronous>, transform_indices = @transform_8, window_bounds = array<i64: 32, 32>}, {pipeline_mode = #tpu.pipeline_mode<synchronous>, transform_indices = @transform_9, window_bounds = array<i64: 1, 32>}, {pipeline_mode = #tpu.pipeline_mode<synchronous>, transform_indices = @transform_10, window_bounds = array<i64: 32, 32>}, {pipeline_mode = #tpu.pipeline_mode<synchronous>, transform_indices = @transform_11, window_bounds = array<i64: 1, 32>}, {pipeline_mode = #tpu.pipeline_mode<synchronous>, transform_indices = @transform_12, window_bounds = array<i64: 1, 32>}, {pipeline_mode = #tpu.pipeline_mode<synchronous>, transform_indices = @transform_13, window_bounds = array<i64: 1, 1>}, {pipeline_mode = #tpu.pipeline_mode<synchronous>, transform_indices = @transform_14, window_bounds = array<i64: 96, 128>}, {pipeline_mode = #tpu.pipeline_mode<synchronous>, transform_indices = @transform_15, window_bounds = array<i64: 1, 128>}, {pipeline_mode = #tpu.pipeline_mode<synchronous>, transform_indices = @transform_16, window_bounds = array<i64: 64, 128>}, {pipeline_mode = #tpu.pipeline_mode<synchronous>, transform_indices = @transform_17, window_bounds = array<i64: 1, 128>}, {pipeline_mode = #tpu.pipeline_mode<synchronous>, transform_indices = @transform_18, window_bounds = array<i64: 32, 64>}, {pipeline_mode = #tpu.pipeline_mode<synchronous>, transform_indices = @transform_19, window_bounds = array<i64: 1, 64>}, {transform_indices = @transform_20, window_bounds = array<i64: 1, 2, 64>}, {pipeline_mode = #tpu.pipeline_mode<synchronous>, transform_indices = @transform_21, window_bounds = array<i64: 2, 2, 32>}, {transform_indices = @transform_22, window_bounds = array<i64: 1, 2, 8>}]} {
    %c0_i32 = arith.constant 0 : i32
    %0 = arith.cmpi eq, %arg0, %c0_i32 : i32
    %1 = arith.extui %0 : i1 to i32
    %c0_i32_0 = arith.constant 0 : i32
    %2 = arith.cmpi ne, %1, %c0_i32_0 : i32
    scf.if %2 {
      %c0_80 = arith.constant 0 : index
      %c0_81 = arith.constant 0 : index
      %c0_82 = arith.constant 0 : index
      %147 = vector.load %arg3[%c0_80, %c0_81, %c0_82] : memref<2x8x64xf32, #tpu.memory_space<vmem>>, vector<2x8x64xf32>
      %cst_83 = arith.constant 0.000000e+00 : f32
      %148 = vector.broadcast %cst_83 : f32 to vector<2x8x64xf32>
      %149 = arith.maximumf %147, %148 : vector<2x8x64xf32>
      %150 = vector.shape_cast %149 : vector<2x8x64xf32> to vector<16x64xf32>
      %c0_84 = arith.constant 0 : index
      %c0_85 = arith.constant 0 : index
      %151 = vector.load %arg6[%c0_84, %c0_85] : memref<64x32xf32, #tpu.memory_space<vmem>>, vector<64x32xf32>
      %cst_86 = arith.constant dense<0.000000e+00> : vector<16x32xf32>
      %152 = tpu.matmul %150, %151, %cst_86 {dimension_numbers = #tpu.dot_dimension_numbers<[1], [0], [0], [1], [0, 0, 1, 1], [], []>} : vector<16x64xf32>, vector<64x32xf32>, vector<16x32xf32> -> vector<16x32xf32>
      %c0_87 = arith.constant 0 : index
      %c0_88 = arith.constant 0 : index
      %153 = vector.load %arg7[%c0_87, %c0_88] : memref<1x32xf32, #tpu.memory_space<vmem>>, vector<1x32xf32>
      %154 = vector.broadcast %153 : vector<1x32xf32> to vector<16x32xf32>
      %155 = arith.addf %152, %154 : vector<16x32xf32>
      %156 = vector.shape_cast %155 : vector<16x32xf32> to vector<2x8x32xf32>
      %c0_89 = arith.constant 0 : index
      %c0_90 = arith.constant 0 : index
      %c0_91 = arith.constant 0 : index
      %157 = vector.load %arg25[%c0_89, %c0_90, %c0_91] : memref<2x8x32xf32, #tpu.memory_space<vmem>>, vector<2x8x32xf32>
      tpu.vector_store %arg25[%c0_89, %c0_90, %c0_91], %156 {strides = array<i32>} : memref<2x8x32xf32, #tpu.memory_space<vmem>>, vector<2x8x32xf32>,
      %cst_92 = arith.constant 0.000000e+00 : f32
      %158 = vector.broadcast %cst_92 : f32 to vector<16x32xf32>
      %159 = arith.maximumf %155, %158 : vector<16x32xf32>
      %c0_93 = arith.constant 0 : index
      %c0_94 = arith.constant 0 : index
      %160 = vector.load %arg8[%c0_93, %c0_94] : memref<32x32xf32, #tpu.memory_space<vmem>>, vector<32x32xf32>
      %cst_95 = arith.constant dense<0.000000e+00> : vector<16x32xf32>
      %161 = tpu.matmul %159, %160, %cst_95 {dimension_numbers = #tpu.dot_dimension_numbers<[1], [0], [0], [1], [0, 0, 1, 1], [], []>} : vector<16x32xf32>, vector<32x32xf32>, vector<16x32xf32> -> vector<16x32xf32>
      %c0_96 = arith.constant 0 : index
      %c0_97 = arith.constant 0 : index
      %162 = vector.load %arg9[%c0_96, %c0_97] : memref<1x32xf32, #tpu.memory_space<vmem>>, vector<1x32xf32>
      %163 = vector.broadcast %162 : vector<1x32xf32> to vector<16x32xf32>
      %164 = arith.addf %161, %163 : vector<16x32xf32>
      %165 = vector.shape_cast %164 : vector<16x32xf32> to vector<2x8x32xf32>
      %c0_98 = arith.constant 0 : index
      %c0_99 = arith.constant 0 : index
      %c0_100 = arith.constant 0 : index
      %166 = vector.load %arg26[%c0_98, %c0_99, %c0_100] : memref<2x8x32xf32, #tpu.memory_space<vmem>>, vector<2x8x32xf32>
      tpu.vector_store %arg26[%c0_98, %c0_99, %c0_100], %165 {strides = array<i32>} : memref<2x8x32xf32, #tpu.memory_space<vmem>>, vector<2x8x32xf32>,
      %c0_101 = arith.constant 0 : index
      %c0_102 = arith.constant 0 : index
      %c0_103 = arith.constant 0 : index
      %167 = vector.load %arg2[%c0_101, %c0_102, %c0_103] : memref<2x2x32xf32, #tpu.memory_space<vmem>>, vector<2x2x32xf32>
      %c0_104 = arith.constant 0 : index
      %c0_105 = arith.constant 0 : index
      %c0_106 = arith.constant 0 : index
      %168 = vector.load %arg27[%c0_104, %c0_105, %c0_106] : memref<2x2x32xf32, #tpu.memory_space<vmem>>, vector<2x2x32xf32>
      tpu.vector_store %arg27[%c0_104, %c0_105, %c0_106], %167 {strides = array<i32>} : memref<2x2x32xf32, #tpu.memory_space<vmem>>, vector<2x2x32xf32>,
      %169 = tpu.iota {dimensions = array<i32: 1>} : vector<1x64xi32>
      %c0_107 = arith.constant 0 : index
      %170 = memref.load %arg1[%c0_107] : memref<2xi32, #tpu.memory_space<smem>>
      %171 = vector.broadcast %170 : i32 to vector<1x64xi32>
      %172 = arith.cmpi eq, %169, %171 : vector<1x64xi32>
      %173 = arith.extui %172 : vector<1x64xi1> to vector<1x64xi32>
      %174 = arith.sitofp %173 : vector<1x64xi32> to vector<1x64xf32>
      %c1_108 = arith.constant 1 : index
      %175 = memref.load %arg1[%c1_108] : memref<2xi32, #tpu.memory_space<smem>>
      %176 = vector.broadcast %175 : i32 to vector<1x64xi32>
      %177 = arith.cmpi eq, %169, %176 : vector<1x64xi32>
      %178 = arith.extui %177 : vector<1x64xi1> to vector<1x64xi32>
      %179 = arith.sitofp %178 : vector<1x64xi32> to vector<1x64xf32>
      %180 = tpu.concatenate %174, %179 in 0 : vector<1x64xf32>, vector<1x64xf32> -> vector<2x64xf32>
      %c0_109 = arith.constant 0 : index
      %c0_110 = arith.constant 0 : index
      %181 = vector.load %arg28[%c0_109, %c0_110] : memref<2x64xf32, #tpu.memory_space<vmem>>, vector<2x64xf32>
      tpu.vector_store %arg28[%c0_109, %c0_110], %180 {strides = array<i32>} : memref<2x64xf32, #tpu.memory_space<vmem>>, vector<2x64xf32>,
    } else {
    }
    %c0 = arith.constant 0 : index
    %c0_1 = arith.constant 0 : index
    %3 = vector.load %arg28[%c0, %c0_1] : memref<2x64xf32, #tpu.memory_space<vmem>>, vector<2x64xf32>
    %c0_2 = arith.constant 0 : index
    %c0_3 = arith.constant 0 : index
    %4 = vector.load %arg5[%c0_2, %c0_3] : memref<64x32xf32, #tpu.memory_space<vmem>>, vector<64x32xf32>
    %cst = arith.constant dense<0.000000e+00> : vector<2x32xf32>
    %5 = tpu.matmul %3, %4, %cst {dimension_numbers = #tpu.dot_dimension_numbers<[1], [0], [0], [1], [0, 0, 1, 1], [], []>} : vector<2x64xf32>, vector<64x32xf32>, vector<2x32xf32> -> vector<2x32xf32>
    %c0_4 = arith.constant 0 : index
    %c0_5 = arith.constant 0 : index
    %c0_6 = arith.constant 0 : index
    %6 = vector.load %arg25[%c0_4, %c0_5, %c0_6] : memref<2x8x32xf32, #tpu.memory_space<vmem>>, vector<2x8x32xf32>
    %c0_7 = arith.constant 0 : index
    %c0_8 = arith.constant 0 : index
    %c0_9 = arith.constant 0 : index
    %7 = vector.load %arg26[%c0_7, %c0_8, %c0_9] : memref<2x8x32xf32, #tpu.memory_space<vmem>>, vector<2x8x32xf32>
    %c0_10 = arith.constant 0 : index
    %c0_11 = arith.constant 0 : index
    %8 = vector.load %arg4[%c0_10, %c0_11] : memref<2x8xf32, #tpu.memory_space<vmem>>, vector<2x8xf32>
    %c1 = arith.constant 1 : index
    %c0_12 = arith.constant 0 : index
    %c0_13 = arith.constant 0 : index
    %9 = vector.load %arg27[%c1, %c0_12, %c0_13] : memref<2x2x32xf32, #tpu.memory_space<vmem>>, vector<1x2x32xf32>
    %10 = vector.shape_cast %9 : vector<1x2x32xf32> to vector<2x32xf32>
    %cst_14 = arith.constant 0.000000e+00 : f32
    %11 = vector.broadcast %cst_14 : f32 to vector<2x32xf32>
    %12 = arith.maximumf %10, %11 : vector<2x32xf32>
    %c0_15 = arith.constant 0 : index
    %c0_16 = arith.constant 0 : index
    %13 = vector.load %arg10[%c0_15, %c0_16] : memref<32x32xf32, #tpu.memory_space<vmem>>, vector<32x32xf32>
    %cst_17 = arith.constant dense<0.000000e+00> : vector<2x32xf32>
    %14 = tpu.matmul %12, %13, %cst_17 {dimension_numbers = #tpu.dot_dimension_numbers<[1], [0], [0], [1], [0, 0, 1, 1], [], []>} : vector<2x32xf32>, vector<32x32xf32>, vector<2x32xf32> -> vector<2x32xf32>
    %c0_18 = arith.constant 0 : index
    %c0_19 = arith.constant 0 : index
    %15 = vector.load %arg11[%c0_18, %c0_19] : memref<1x32xf32, #tpu.memory_space<vmem>>, vector<1x32xf32>
    %16 = vector.broadcast %15 : vector<1x32xf32> to vector<2x32xf32>
    %17 = arith.addf %14, %16 : vector<2x32xf32>
    %cst_20 = arith.constant 0.000000e+00 : f32
    %18 = vector.broadcast %cst_20 : f32 to vector<2x32xf32>
    %19 = arith.maximumf %17, %18 : vector<2x32xf32>
    %c0_21 = arith.constant 0 : index
    %c0_22 = arith.constant 0 : index
    %20 = vector.load %arg12[%c0_21, %c0_22] : memref<32x32xf32, #tpu.memory_space<vmem>>, vector<32x32xf32>
    %cst_23 = arith.constant dense<0.000000e+00> : vector<2x32xf32>
    %21 = tpu.matmul %19, %20, %cst_23 {dimension_numbers = #tpu.dot_dimension_numbers<[1], [0], [0], [1], [0, 0, 1, 1], [], []>} : vector<2x32xf32>, vector<32x32xf32>, vector<2x32xf32> -> vector<2x32xf32>
    %c0_24 = arith.constant 0 : index
    %c0_25 = arith.constant 0 : index
    %22 = vector.load %arg13[%c0_24, %c0_25] : memref<1x32xf32, #tpu.memory_space<vmem>>, vector<1x32xf32>
    %23 = vector.broadcast %22 : vector<1x32xf32> to vector<2x32xf32>
    %24 = arith.addf %21, %23 : vector<2x32xf32>
    %25 = vector.shape_cast %24 : vector<2x32xf32> to vector<2x1x32xf32>
    %26 = vector.broadcast %25 : vector<2x1x32xf32> to vector<2x8x32xf32>
    %27 = arith.addf %7, %26 : vector<2x8x32xf32>
    %28 = math.tanh %27 : vector<2x8x32xf32>
    %c0_26 = arith.constant 0 : index
    %c0_27 = arith.constant 0 : index
    %29 = vector.load %arg14[%c0_26, %c0_27] : memref<1x32xf32, #tpu.memory_space<vmem>>, vector<1x32xf32>
    %30 = vector.shape_cast %29 : vector<1x32xf32> to vector<1x1x32xf32>
    %31 = vector.broadcast %30 : vector<1x1x32xf32> to vector<2x8x32xf32>
    %32 = arith.mulf %28, %31 : vector<2x8x32xf32>
    %cst_28 = arith.constant dense<0.000000e+00> : vector<2x8xf32>
    %33 = vector.multi_reduction <add>, %32, %cst_28 [2] : vector<2x8x32xf32> to vector<2x8xf32>
    %c0_29 = arith.constant 0 : index
    %c0_30 = arith.constant 0 : index
    %34 = vector.load %arg15[%c0_29, %c0_30] : memref<1x1xf32, #tpu.memory_space<vmem>>, vector<1x1xf32>
    %35 = vector.broadcast %34 : vector<1x1xf32> to vector<2x8xf32>
    %36 = arith.addf %33, %35 : vector<2x8xf32>
    %cst_31 = arith.constant 0.000000e+00 : f32
    %37 = vector.broadcast %cst_31 : f32 to vector<2x8xf32>
    %38 = arith.cmpf oeq, %8, %37 : vector<2x8xf32>
    %cst_32 = arith.constant 0xFF800000 : f32
    %39 = vector.broadcast %cst_32 : f32 to vector<2x8xf32>
    %40 = arith.select %38, %39, %36 : vector<2x8xi1>, vector<2x8xf32>
    %cst_33 = arith.constant dense<0xFF800000> : vector<2xf32>
    %41 = vector.multi_reduction <maximumf>, %40, %cst_33 [1] : vector<2x8xf32> to vector<2xf32>
    %42 = vector.shape_cast %41 : vector<2xf32> to vector<2x1xf32>
    %43 = vector.broadcast %42 : vector<2x1xf32> to vector<2x8xf32>
    %44 = arith.subf %40, %43 : vector<2x8xf32>
    %45 = math.exp %44 : vector<2x8xf32>
    %cst_34 = arith.constant dense<0.000000e+00> : vector<2xf32>
    %46 = vector.multi_reduction <add>, %45, %cst_34 [1] : vector<2x8xf32> to vector<2xf32>
    %47 = vector.shape_cast %46 : vector<2xf32> to vector<2x1xf32>
    %48 = tpu.reciprocal %47 : vector<2x1xf32> -> vector<2x1xf32>
    %49 = vector.broadcast %48 : vector<2x1xf32> to vector<2x8xf32>
    %50 = arith.mulf %45, %49 : vector<2x8xf32>
    %51 = vector.shape_cast %50 : vector<2x8xf32> to vector<2x1x8xf32>
    "tpu.trace_start"() <{level = 10 : i32, message = "bqs,bsh->bqh"}> : () -> ()
    %cst_35 = arith.constant dense<0.000000e+00> : vector<2x1x32xf32>
    %52 = tpu.matmul %51, %6, %cst_35 {dimension_numbers = #tpu.dot_dimension_numbers<[2], [1], [1], [2], [0, 0, 0, 1, 1, 2], [0], [0]>} : vector<2x1x8xf32>, vector<2x8x32xf32>, vector<2x1x32xf32> -> vector<2x1x32xf32>
    "tpu.trace_stop"() : () -> ()
    %53 = vector.shape_cast %52 : vector<2x1x32xf32> to vector<2x32xf32>
    %54 = tpu.concatenate %5, %53 in 1 : vector<2x32xf32>, vector<2x32xf32> -> vector<2x64xf32>
    %c0_36 = arith.constant 0 : index
    %c0_37 = arith.constant 0 : index
    %c0_38 = arith.constant 0 : index
    %55 = vector.load %arg27[%c0_36, %c0_37, %c0_38] : memref<2x2x32xf32, #tpu.memory_space<vmem>>, vector<1x2x32xf32>
    %56 = vector.shape_cast %55 : vector<1x2x32xf32> to vector<2x32xf32>
    %57 = tpu.concatenate %54, %56 in 1 : vector<2x64xf32>, vector<2x32xf32> -> vector<2x96xf32>
    %c0_39 = arith.constant 0 : index
    %c0_40 = arith.constant 0 : index
    %58 = vector.load %arg16[%c0_39, %c0_40] : memref<96x128xf32, #tpu.memory_space<vmem>>, vector<96x128xf32>
    %cst_41 = arith.constant dense<0.000000e+00> : vector<2x128xf32>
    %59 = tpu.matmul %57, %58, %cst_41 {dimension_numbers = #tpu.dot_dimension_numbers<[1], [0], [0], [1], [0, 0, 1, 1], [], []>} : vector<2x96xf32>, vector<96x128xf32>, vector<2x128xf32> -> vector<2x128xf32>
    %c0_42 = arith.constant 0 : index
    %c0_43 = arith.constant 0 : index
    %60 = vector.load %arg17[%c0_42, %c0_43] : memref<1x128xf32, #tpu.memory_space<vmem>>, vector<1x128xf32>
    %61 = vector.broadcast %60 : vector<1x128xf32> to vector<2x128xf32>
    %62 = arith.addf %59, %61 : vector<2x128xf32>
    %63 = vector.extract_strided_slice %62 {offsets = [0, 0], sizes = [2, 32], strides = [1, 1]} : vector<2x128xf32> to vector<2x32xf32>
    %64 = arith.negf %63 : vector<2x32xf32>
    %65 = math.exp %64 : vector<2x32xf32>
    %cst_44 = arith.constant 1.000000e+00 : f32
    %66 = vector.broadcast %cst_44 : f32 to vector<2x32xf32>
    %67 = arith.addf %66, %65 : vector<2x32xf32>
    %68 = arith.divf %66, %67 : vector<2x32xf32>
    %69 = vector.extract_strided_slice %62 {offsets = [0, 32], sizes = [2, 32], strides = [1, 1]} : vector<2x128xf32> to vector<2x32xf32>
    %70 = arith.negf %69 : vector<2x32xf32>
    %71 = math.exp %70 : vector<2x32xf32>
    %cst_45 = arith.constant 1.000000e+00 : f32
    %72 = vector.broadcast %cst_45 : f32 to vector<2x32xf32>
    %73 = arith.addf %72, %71 : vector<2x32xf32>
    %74 = arith.divf %72, %73 : vector<2x32xf32>
    %75 = vector.extract_strided_slice %62 {offsets = [0, 64], sizes = [2, 32], strides = [1, 1]} : vector<2x128xf32> to vector<2x32xf32>
    %76 = vector.extract_strided_slice %62 {offsets = [0, 96], sizes = [2, 32], strides = [1, 1]} : vector<2x128xf32> to vector<2x32xf32>
    %77 = arith.mulf %68, %76 : vector<2x32xf32>
    %78 = arith.addf %75, %77 : vector<2x32xf32>
    %79 = math.tanh %78 : vector<2x32xf32>
    %cst_46 = arith.constant 1.000000e+00 : f32
    %80 = vector.broadcast %cst_46 : f32 to vector<2x32xf32>
    %81 = arith.subf %80, %74 : vector<2x32xf32>
    %82 = arith.mulf %81, %79 : vector<2x32xf32>
    %83 = arith.mulf %74, %56 : vector<2x32xf32>
    %84 = arith.addf %82, %83 : vector<2x32xf32>
    %c1_47 = arith.constant 1 : index
    %c0_48 = arith.constant 0 : index
    %c0_49 = arith.constant 0 : index
    %85 = vector.load %arg27[%c1_47, %c0_48, %c0_49] : memref<2x2x32xf32, #tpu.memory_space<vmem>>, vector<1x2x32xf32>
    %86 = vector.shape_cast %85 : vector<1x2x32xf32> to vector<2x32xf32>
    %87 = tpu.concatenate %84, %86 in 1 : vector<2x32xf32>, vector<2x32xf32> -> vector<2x64xf32>
    %c0_50 = arith.constant 0 : index
    %c0_51 = arith.constant 0 : index
    %88 = vector.load %arg18[%c0_50, %c0_51] : memref<64x128xf32, #tpu.memory_space<vmem>>, vector<64x128xf32>
    %cst_52 = arith.constant dense<0.000000e+00> : vector<2x128xf32>
    %89 = tpu.matmul %87, %88, %cst_52 {dimension_numbers = #tpu.dot_dimension_numbers<[1], [0], [0], [1], [0, 0, 1, 1], [], []>} : vector<2x64xf32>, vector<64x128xf32>, vector<2x128xf32> -> vector<2x128xf32>
    %c0_53 = arith.constant 0 : index
    %c0_54 = arith.constant 0 : index
    %90 = vector.load %arg19[%c0_53, %c0_54] : memref<1x128xf32, #tpu.memory_space<vmem>>, vector<1x128xf32>
    %91 = vector.broadcast %90 : vector<1x128xf32> to vector<2x128xf32>
    %92 = arith.addf %89, %91 : vector<2x128xf32>
    %93 = vector.extract_strided_slice %92 {offsets = [0, 0], sizes = [2, 32], strides = [1, 1]} : vector<2x128xf32> to vector<2x32xf32>
    %94 = arith.negf %93 : vector<2x32xf32>
    %95 = math.exp %94 : vector<2x32xf32>
    %cst_55 = arith.constant 1.000000e+00 : f32
    %96 = vector.broadcast %cst_55 : f32 to vector<2x32xf32>
    %97 = arith.addf %96, %95 : vector<2x32xf32>
    %98 = arith.divf %96, %97 : vector<2x32xf32>
    %99 = vector.extract_strided_slice %92 {offsets = [0, 32], sizes = [2, 32], strides = [1, 1]} : vector<2x128xf32> to vector<2x32xf32>
    %100 = arith.negf %99 : vector<2x32xf32>
    %101 = math.exp %100 : vector<2x32xf32>
    %cst_56 = arith.constant 1.000000e+00 : f32
    %102 = vector.broadcast %cst_56 : f32 to vector<2x32xf32>
    %103 = arith.addf %102, %101 : vector<2x32xf32>
    %104 = arith.divf %102, %103 : vector<2x32xf32>
    %105 = vector.extract_strided_slice %92 {offsets = [0, 64], sizes = [2, 32], strides = [1, 1]} : vector<2x128xf32> to vector<2x32xf32>
    %106 = vector.extract_strided_slice %92 {offsets = [0, 96], sizes = [2, 32], strides = [1, 1]} : vector<2x128xf32> to vector<2x32xf32>
    %107 = arith.mulf %98, %106 : vector<2x32xf32>
    %108 = arith.addf %105, %107 : vector<2x32xf32>
    %109 = math.tanh %108 : vector<2x32xf32>
    %cst_57 = arith.constant 1.000000e+00 : f32
    %110 = vector.broadcast %cst_57 : f32 to vector<2x32xf32>
    %111 = arith.subf %110, %104 : vector<2x32xf32>
    %112 = arith.mulf %111, %109 : vector<2x32xf32>
    %113 = arith.mulf %104, %86 : vector<2x32xf32>
    %114 = arith.addf %112, %113 : vector<2x32xf32>
    %cst_58 = arith.constant 0.000000e+00 : f32
    %115 = vector.broadcast %cst_58 : f32 to vector<2x32xf32>
    %116 = arith.maximumf %114, %115 : vector<2x32xf32>
    %c0_59 = arith.constant 0 : index
    %c0_60 = arith.constant 0 : index
    %117 = vector.load %arg20[%c0_59, %c0_60] : memref<32x64xf32, #tpu.memory_space<vmem>>, vector<32x64xf32>
    %cst_61 = arith.constant dense<0.000000e+00> : vector<2x64xf32>
    %118 = tpu.matmul %116, %117, %cst_61 {dimension_numbers = #tpu.dot_dimension_numbers<[1], [0], [0], [1], [0, 0, 1, 1], [], []>} : vector<2x32xf32>, vector<32x64xf32>, vector<2x64xf32> -> vector<2x64xf32>
    %c0_62 = arith.constant 0 : index
    %c0_63 = arith.constant 0 : index
    %119 = vector.load %arg21[%c0_62, %c0_63] : memref<1x64xf32, #tpu.memory_space<vmem>>, vector<1x64xf32>
    %120 = vector.broadcast %119 : vector<1x64xf32> to vector<2x64xf32>
    %121 = arith.addf %118, %120 : vector<2x64xf32>
    %122 = vector.shape_cast %84 : vector<2x32xf32> to vector<1x2x32xf32>
    %123 = vector.shape_cast %114 : vector<2x32xf32> to vector<1x2x32xf32>
    %124 = tpu.concatenate %122, %123 in 0 : vector<1x2x32xf32>, vector<1x2x32xf32> -> vector<2x2x32xf32>
    %c0_64 = arith.constant 0 : index
    %c0_65 = arith.constant 0 : index
    %c0_66 = arith.constant 0 : index
    %125 = vector.load %arg27[%c0_64, %c0_65, %c0_66] : memref<2x2x32xf32, #tpu.memory_space<vmem>>, vector<2x2x32xf32>
    tpu.vector_store %arg27[%c0_64, %c0_65, %c0_66], %124 {strides = array<i32>} : memref<2x2x32xf32, #tpu.memory_space<vmem>>, vector<2x2x32xf32>,
    %c0_67 = arith.constant 0 : index
    %c0_68 = arith.constant 0 : index
    %c0_69 = arith.constant 0 : index
    %126 = vector.load %arg23[%c0_67, %c0_68, %c0_69] : memref<2x2x32xf32, #tpu.memory_space<vmem>>, vector<2x2x32xf32>
    tpu.vector_store %arg23[%c0_67, %c0_68, %c0_69], %124 {strides = array<i32>} : memref<2x2x32xf32, #tpu.memory_space<vmem>>, vector<2x2x32xf32>,
    %c0_70 = arith.constant 0 : index
    %c0_71 = arith.constant 0 : index
    %c0_72 = arith.constant 0 : index
    %127 = vector.load %arg22[%c0_70, %c0_71, %c0_72] : memref<1x2x64xf32, #tpu.memory_space<vmem>>, vector<1x2x64xf32>
    %128 = vector.shape_cast %127 : vector<1x2x64xf32> to vector<2x64xf32>
    %129 = vector.shape_cast %121 : vector<2x64xf32> to vector<1x2x64xf32>
    tpu.vector_store %arg22[%c0_70, %c0_71, %c0_72], %129 {strides = array<i32>} : memref<1x2x64xf32, #tpu.memory_space<vmem>>, vector<1x2x64xf32>,
    %c0_73 = arith.constant 0 : index
    %c0_74 = arith.constant 0 : index
    %c0_75 = arith.constant 0 : index
    %130 = vector.load %arg24[%c0_73, %c0_74, %c0_75] : memref<1x2x8xf32, #tpu.memory_space<vmem>>, vector<1x2x8xf32>
    %131 = vector.shape_cast %130 : vector<1x2x8xf32> to vector<2x8xf32>
    %132 = vector.shape_cast %50 : vector<2x8xf32> to vector<1x2x8xf32>
    tpu.vector_store %arg24[%c0_73, %c0_74, %c0_75], %132 {strides = array<i32>} : memref<1x2x8xf32, #tpu.memory_space<vmem>>, vector<1x2x8xf32>,
    %133 = tpu.iota {dimensions = array<i32: 1>} : vector<2x64xi32>
    %cst_76 = arith.constant dense<0xFF800000> : vector<2xf32>
    %134 = vector.multi_reduction <maximumf>, %121, %cst_76 [1] : vector<2x64xf32> to vector<2xf32>
    %135 = vector.shape_cast %134 : vector<2xf32> to vector<2x1xf32>
    %136 = vector.broadcast %135 : vector<2x1xf32> to vector<2x64xf32>
    %137 = arith.cmpf oeq, %121, %136 : vector<2x64xf32>
    %c64_i32 = arith.constant 64 : i32
    %138 = vector.broadcast %c64_i32 : i32 to vector<2x64xi32>
    %139 = arith.select %137, %133, %138 : vector<2x64xi1>, vector<2x64xi32>
    %cst_77 = arith.constant dense<2147483647> : vector<2xi32>
    %140 = vector.multi_reduction <minsi>, %139, %cst_77 [1] : vector<2x64xi32> to vector<2xi32>
    %141 = vector.shape_cast %140 : vector<2xi32> to vector<2x1xi32>
    %142 = vector.broadcast %141 : vector<2x1xi32> to vector<2x64xi32>
    %143 = arith.cmpi eq, %133, %142 : vector<2x64xi32>
    %144 = arith.extui %143 : vector<2x64xi1> to vector<2x64xi32>
    %145 = arith.sitofp %144 : vector<2x64xi32> to vector<2x64xf32>
    %c0_78 = arith.constant 0 : index
    %c0_79 = arith.constant 0 : index
    %146 = vector.load %arg28[%c0_78, %c0_79] : memref<2x64xf32, #tpu.memory_space<vmem>>, vector<2x64xf32>
    tpu.vector_store %arg28[%c0_78, %c0_79], %145 {strides = array<i32>} : memref<2x64xf32, #tpu.memory_space<vmem>>, vector<2x64xf32>,
    return
  }
  func.func @transform_0(%arg0: i32, %arg1: memref<2xi32, #tpu.memory_space<smem>>) -> (i32, i32, i32) {
    %c0_i32 = arith.constant 0 : i32
    %c0_i32_0 = arith.constant 0 : i32
    %c0_i32_1 = arith.constant 0 : i32
    %c0_i32_2 = arith.constant 0 : i32
    return %c0_i32, %c0_i32_0, %c0_i32_1 : i32, i32, i32
  }
  func.func @transform_1(%arg0: i32, %arg1: memref<2xi32, #tpu.memory_space<smem>>) -> (i32, i32, i32) {
    %c0_i32 = arith.constant 0 : i32
    %c0_i32_0 = arith.constant 0 : i32
    %c0_i32_1 = arith.constant 0 : i32
    %c0_i32_2 = arith.constant 0 : i32
    return %c0_i32, %c0_i32_0, %c0_i32_1 : i32, i32, i32
  }
  func.func @transform_2(%arg0: i32, %arg1: memref<2xi32, #tpu.memory_space<smem>>) -> (i32, i32) {
    %c0_i32 = arith.constant 0 : i32
    %c0_i32_0 = arith.constant 0 : i32
    %c0_i32_1 = arith.constant 0 : i32
    return %c0_i32, %c0_i32_0 : i32, i32
  }
  func.func @transform_3(%arg0: i32, %arg1: memref<2xi32, #tpu.memory_space<smem>>) -> (i32, i32) {
    %c0_i32 = arith.constant 0 : i32
    %c0_i32_0 = arith.constant 0 : i32
    %c0_i32_1 = arith.constant 0 : i32
    return %c0_i32, %c0_i32_0 : i32, i32
  }
  func.func @transform_4(%arg0: i32, %arg1: memref<2xi32, #tpu.memory_space<smem>>) -> (i32, i32) {
    %c0_i32 = arith.constant 0 : i32
    %c0_i32_0 = arith.constant 0 : i32
    %c0_i32_1 = arith.constant 0 : i32
    return %c0_i32, %c0_i32_0 : i32, i32
  }
  func.func @transform_5(%arg0: i32, %arg1: memref<2xi32, #tpu.memory_space<smem>>) -> (i32, i32) {
    %c0_i32 = arith.constant 0 : i32
    %c0_i32_0 = arith.constant 0 : i32
    %c0_i32_1 = arith.constant 0 : i32
    return %c0_i32, %c0_i32_0 : i32, i32
  }
  func.func @transform_6(%arg0: i32, %arg1: memref<2xi32, #tpu.memory_space<smem>>) -> (i32, i32) {
    %c0_i32 = arith.constant 0 : i32
    %c0_i32_0 = arith.constant 0 : i32
    %c0_i32_1 = arith.constant 0 : i32
    return %c0_i32, %c0_i32_0 : i32, i32
  }
  func.func @transform_7(%arg0: i32, %arg1: memref<2xi32, #tpu.memory_space<smem>>) -> (i32, i32) {
    %c0_i32 = arith.constant 0 : i32
    %c0_i32_0 = arith.constant 0 : i32
    %c0_i32_1 = arith.constant 0 : i32
    return %c0_i32, %c0_i32_0 : i32, i32
  }
  func.func @transform_8(%arg0: i32, %arg1: memref<2xi32, #tpu.memory_space<smem>>) -> (i32, i32) {
    %c0_i32 = arith.constant 0 : i32
    %c0_i32_0 = arith.constant 0 : i32
    %c0_i32_1 = arith.constant 0 : i32
    return %c0_i32, %c0_i32_0 : i32, i32
  }
  func.func @transform_9(%arg0: i32, %arg1: memref<2xi32, #tpu.memory_space<smem>>) -> (i32, i32) {
    %c0_i32 = arith.constant 0 : i32
    %c0_i32_0 = arith.constant 0 : i32
    %c0_i32_1 = arith.constant 0 : i32
    return %c0_i32, %c0_i32_0 : i32, i32
  }
  func.func @transform_10(%arg0: i32, %arg1: memref<2xi32, #tpu.memory_space<smem>>) -> (i32, i32) {
    %c0_i32 = arith.constant 0 : i32
    %c0_i32_0 = arith.constant 0 : i32
    %c0_i32_1 = arith.constant 0 : i32
    return %c0_i32, %c0_i32_0 : i32, i32
  }
  func.func @transform_11(%arg0: i32, %arg1: memref<2xi32, #tpu.memory_space<smem>>) -> (i32, i32) {
    %c0_i32 = arith.constant 0 : i32
    %c0_i32_0 = arith.constant 0 : i32
    %c0_i32_1 = arith.constant 0 : i32
    return %c0_i32, %c0_i32_0 : i32, i32
  }
  func.func @transform_12(%arg0: i32, %arg1: memref<2xi32, #tpu.memory_space<smem>>) -> (i32, i32) {
    %c0_i32 = arith.constant 0 : i32
    %c0_i32_0 = arith.constant 0 : i32
    %c0_i32_1 = arith.constant 0 : i32
    return %c0_i32, %c0_i32_0 : i32, i32
  }
  func.func @transform_13(%arg0: i32, %arg1: memref<2xi32, #tpu.memory_space<smem>>) -> (i32, i32) {
    %c0_i32 = arith.constant 0 : i32
    %c0_i32_0 = arith.constant 0 : i32
    %c0_i32_1 = arith.constant 0 : i32
    return %c0_i32, %c0_i32_0 : i32, i32
  }
  func.func @transform_14(%arg0: i32, %arg1: memref<2xi32, #tpu.memory_space<smem>>) -> (i32, i32) {
    %c0_i32 = arith.constant 0 : i32
    %c0_i32_0 = arith.constant 0 : i32
    %c0_i32_1 = arith.constant 0 : i32
    return %c0_i32, %c0_i32_0 : i32, i32
  }
  func.func @transform_15(%arg0: i32, %arg1: memref<2xi32, #tpu.memory_space<smem>>) -> (i32, i32) {
    %c0_i32 = arith.constant 0 : i32
    %c0_i32_0 = arith.constant 0 : i32
    %c0_i32_1 = arith.constant 0 : i32
    return %c0_i32, %c0_i32_0 : i32, i32
  }
  func.func @transform_16(%arg0: i32, %arg1: memref<2xi32, #tpu.memory_space<smem>>) -> (i32, i32) {
    %c0_i32 = arith.constant 0 : i32
    %c0_i32_0 = arith.constant 0 : i32
    %c0_i32_1 = arith.constant 0 : i32
    return %c0_i32, %c0_i32_0 : i32, i32
  }
  func.func @transform_17(%arg0: i32, %arg1: memref<2xi32, #tpu.memory_space<smem>>) -> (i32, i32) {
    %c0_i32 = arith.constant 0 : i32
    %c0_i32_0 = arith.constant 0 : i32
    %c0_i32_1 = arith.constant 0 : i32
    return %c0_i32, %c0_i32_0 : i32, i32
  }
  func.func @transform_18(%arg0: i32, %arg1: memref<2xi32, #tpu.memory_space<smem>>) -> (i32, i32) {
    %c0_i32 = arith.constant 0 : i32
    %c0_i32_0 = arith.constant 0 : i32
    %c0_i32_1 = arith.constant 0 : i32
    return %c0_i32, %c0_i32_0 : i32, i32
  }
  func.func @transform_19(%arg0: i32, %arg1: memref<2xi32, #tpu.memory_space<smem>>) -> (i32, i32) {
    %c0_i32 = arith.constant 0 : i32
    %c0_i32_0 = arith.constant 0 : i32
    %c0_i32_1 = arith.constant 0 : i32
    return %c0_i32, %c0_i32_0 : i32, i32
  }
  func.func @transform_20(%arg0: i32, %arg1: memref<2xi32, #tpu.memory_space<smem>>) -> (i32, i32, i32) {
    %c0_i32 = arith.constant 0 : i32
    %c0_i32_0 = arith.constant 0 : i32
    %c0_i32_1 = arith.constant 0 : i32
    return %arg0, %c0_i32, %c0_i32_0 : i32, i32, i32
  }
  func.func @transform_21(%arg0: i32, %arg1: memref<2xi32, #tpu.memory_space<smem>>) -> (i32, i32, i32) {
    %c0_i32 = arith.constant 0 : i32
    %c0_i32_0 = arith.constant 0 : i32
    %c0_i32_1 = arith.constant 0 : i32
    %c0_i32_2 = arith.constant 0 : i32
    return %c0_i32, %c0_i32_0, %c0_i32_1 : i32, i32, i32
  }
  func.func @transform_22(%arg0: i32, %arg1: memref<2xi32, #tpu.memory_space<smem>>) -> (i32, i32, i32) {
    %c0_i32 = arith.constant 0 : i32
    %c0_i32_0 = arith.constant 0 : i32
    %c0_i32_1 = arith.constant 0 : i32
    return %arg0, %c0_i32, %c0_i32_0 : i32, i32, i32
  }
}

</mosaic_0001>

<bundles_post_ra>
// kernel: tpu_custom_call.1
= control target key start
LH: loop header
LB: loop body
LE: loop exit
PB: predicated region body
PF: predicated region fallthrough
CT: control target
= control target key end

     0   :  { %s2519_s0 = inlined_call_operand.vmem [shape: s32[2], index: 0, kind: input, shape index: {}]   ;;  %s2520_s1 = inlined_call_operand.hbm [shape: f32[2,2,32], index: 1, kind: input, shape index: {}]   ;;  %s2521_s2 = inlined_call_operand.hbm [shape: f32[2,8,64], index: 2, kind: input, shape index: {}]   ;;  %s2522_s3 = inlined_call_operand.hbm [shape: f32[2,8], index: 3, kind: input, shape index: {}]   ;;  %s2523_s4 = inlined_call_operand.vmem [shape: f32[64,32], index: 4, kind: input, shape index: {}]   ;;  %s2524_s5 = inlined_call_operand.vmem [shape: f32[64,32], index: 5, kind: input, shape index: {}]   ;;  %s2525_s6 = inlined_call_operand.hbm [shape: f32[1,32], index: 6, kind: input, shape index: {}]   ;;  %s2526_s7 = inlined_call_operand.hbm [shape: f32[32,32], index: 7, kind: input, shape index: {}]   ;;  %s2527_s8 = inlined_call_operand.hbm [shape: f32[1,32], index: 8, kind: input, shape index: {}]   ;;  %s2528_s9 = inlined_call_operand.hbm [shape: f32[32,32], index: 9, kind: input, shape index: {}]   ;;  %s2529_s10 = inlined_call_operand.hbm [shape: f32[1,32], index: 10, kind: input, shape index: {}]   ;;  %s2530_s11 = inlined_call_operand.hbm [shape: f32[32,32], index: 11, kind: input, shape index: {}]   ;;  %s2531_s12 = inlined_call_operand.hbm [shape: f32[1,32], index: 12, kind: input, shape index: {}]   ;;  %s2532_s13 = inlined_call_operand.hbm [shape: f32[1,32], index: 13, kind: input, shape index: {}]   ;;  %s2533_s15 = inlined_call_operand.vmem [shape: f32[96,128], index: 15, kind: input, shape index: {}]   ;;  %s2534_s16 = inlined_call_operand.hbm [shape: f32[1,128], index: 16, kind: input, shape index: {}]   ;;  %s2535_s17 = inlined_call_operand.vmem [shape: f32[64,128], index: 17, kind: input, shape index: {}]   ;;  %s2536_s18 = inlined_call_operand.hbm [shape: f32[1,128], index: 18, kind: input, shape index: {}]   ;;  %s2537_s19 = inlined_call_operand.vmem [shape: f32[32,64], index: 19, kind: input, shape index: {}]   ;;  %s2538_s20 = inlined_call_operand.vmem [shape: f32[1,64], index: 20, kind: input, shape index: {}]   ;;  %s2539_s21 = inlined_call_operand.hbm [shape: f32[1,2,64], index: 21, kind: output, shape index: {0}]   ;;  %s2540_s22 = inlined_call_operand.hbm [shape: f32[2,2,32], index: 22, kind: output, shape index: {1}]   ;;  %s2541_s23 = inlined_call_operand.hbm [shape: f32[1,2,8], index: 23, kind: output, shape index: {2}]   ;;  %s2542_s14 = inlined_call_operand.<no memory space> [shape: f32[1,1], index: 14, kind: input, shape index: {}]  }
   0x1   :  { %2546 = sst [smem:[#allocation44_spill]] %s2519_s0  ;;  %v33_v0 = vstv %s2542_s14 }
   0x2   :  { %2547 = sst [smem:[#allocation45_spill]] %s2520_s1  ;;  %34 = vst [vmem:[#allocation8] sm:$0x1] %v33_v0 }
   0x3   :  { %2548 = sst [smem:[#allocation46_spill]] %s2521_s2 }
   0x4   :  { %2549 = sst [smem:[#allocation47_spill]] %s2522_s3 }
   0x5   :  { %2550 = sst [smem:[#allocation48_spill]] %s2523_s4 }
   0x6   :  { %2551 = sst [smem:[#allocation49_spill]] %s2524_s5 }
   0x7   :  { %2552 = sst [smem:[#allocation50_spill]] %s2525_s6 }
   0x8   :  { %2553 = sst [smem:[#allocation51_spill]] %s2526_s7 }
   0x9   :  { %2554 = sst [smem:[#allocation52_spill]] %s2535_s17 }
   0xa   :  { %s2555_s24 = sld [smem:[#allocation44_spill]] }
  0x10   :  { %s29_s17 = sshll.u32 %s2555_s24, 4  ;;  %s30_s17 = int_to_ptr.vmem [resolvable:$true] %s29_s17 }
  0x11   :  { %s1697_s1 = scalar_lea.vmem %s30_s17, 16  ;;  %p1702_p1 = scmp.lt.s32.totalorder %s30_s17, %s30_s17 }
  0x12   :  { %p1698_p0 = scmp.ne.s32.totalorder %s30_s17, %s1697_s1  ;;  %p1703_p2 = scmp.lt.s32.totalorder %s1697_s1, %s1697_s1 }
  0x14   :  { %p1704_p3 = por %p1703_p2, %p1702_p1 }
  0x16   :  { %p1705_p4 = pnand %p1704_p3, %p1698_p0 }
  0x18   :  { %1708 = shalt.err (!%p1705_p4)  }
  0x19   :  { %s2049_s26 = smov [#allocation7]  }
  0x1a   :  { %32 = dma.vmem_to_smem %s30_s17, 16, %s2049_s26, [#allocation6] }
  0x1b   :  { %2029 = dma.done.wait [#allocation6], 16 }
  0x1c   :  { %2030 = vsyncadd [#allocation6], 4294967280 }
  0x1d   :  { %36 = sfence }
  0x1e   :  { %37 = vsyncpa [#allocation10], 0 }
  0x1f   :  { %38 = vsyncpa [#allocation13], 0 }
  0x20   :  { %39 = vsyncpa [#allocation16], 0 }
  0x21   :  { %40 = vsyncpa [#allocation19], 0 }
  0x22   :  { %41 = vsyncpa [#allocation22], 0 }
  0x23   :  { %42 = vsyncpa [#allocation25], 0 }
  0x24   :  { %43 = vsyncpa [#allocation28], 0 }
  0x25   :  { %44 = vsyncpa [#allocation11], 0 }
  0x26   :  { %45 = vsyncpa [#allocation32], 0  ;;  %s2050_s14 = smov [#allocation12]  }
  0x27   :  { %s63_s2 = sshll.u32 %s2050_s14, 4  ;;  %s64_s2 = int_to_ptr.vmem [resolvable:$true] %s63_s2 }
  0x28   :  { %s1717_s6 = scalar_lea.vmem %s64_s2, 256  ;;  %p1722_p6 = scmp.lt.s32.totalorder %s64_s2, %s64_s2 }
  0x29   :  { %p1718_p5 = scmp.ne.s32.totalorder %s64_s2, %s1717_s6  ;;  %p1723_p7 = scmp.lt.s32.totalorder %s1717_s6, %s1717_s6 }
  0x2b   :  { %p1724_p8 = por %p1723_p7, %p1722_p6 }
  0x2d   :  { %p1725_p9 = pnand %p1724_p8, %p1718_p5 }
  0x2f   :  { %1728 = shalt.err (!%p1725_p9)
}
  0x30   :  { %s2051_s17 = smov 128   ;;  %s2052_s27 = smov 8  }
  0x31   :  { %s2556_s29 = sld [smem:[#allocation46_spill]]  ;;  %s2053_s3 = smov [#allocation15]  }
  0x32   :  { %s90_s0 = sshll.u32 %s2053_s3, 4  ;;  %s2054_s4 = smov [#allocation18]   ;;  %s91_s0 = int_to_ptr.vmem [resolvable:$true] %s90_s0 }
  0x33   :  { %s112_s30 = sshll.u32 %s2054_s4, 4  ;;  %s1737_s24 = scalar_lea.vmem %s91_s0, 16  ;;  %s113_s30 = int_to_ptr.vmem [resolvable:$true] %s112_s30 }
  0x34   :  { %p1738_p10 = scmp.ne.s32.totalorder %s91_s0, %s1737_s24  ;;  %s1741_s25 = scalar_lea.vmem %s91_s0, 32 }
  0x35   :  { %p1742_p11 = scmp.lt.s32.totalorder %s91_s0, %s91_s0  ;;  %p1743_p12 = scmp.lt.s32.totalorder %s1741_s25, %s1737_s24 }
  0x37   :  { %69 = dma.hbm_to_vmem [thread:$0]  %s2556_s29, 256, %s64_s2, [#allocation13], %s2051_s17, %s2051_s17, %s2052_s27  }
  0x38   :  { %p1744_p13 = por %p1743_p12, %p1742_p11 }
  0x3a   :  { %p1745_p0 = pnand %p1744_p13, %p1738_p10 }
  0x3c   :  { %1748 = shalt.err (!%p1745_p0)
}
  0x3d   :  { %s2557_s26 = sld [smem:[#allocation50_spill]]  ;;  %s1757_s14 = scalar_lea.vmem %s113_s30, 16 }
  0x3e   :  { %p1758_p1 = scmp.ne.s32.totalorder %s113_s30, %s1757_s14  ;;  %s1761_s2 = scalar_lea.vmem %s113_s30, 32 }
  0x3f   :  { %p1762_p2 = scmp.lt.s32.totalorder %s113_s30, %s113_s30  ;;  %p1763_p3 = scmp.lt.s32.totalorder %s1761_s2, %s1757_s14 }
  0x41   :  { %p1764_p4 = por %p1763_p3, %p1762_p2 }
  0x43   :  { %93 = dma.hbm_to_vmem [thread:$0]  %s2557_s26, 16, %s91_s0, [#allocation16]  }
  0x44   :  { %p1765_p5 = pnand %p1764_p4, %p1758_p1 }
  0x46   :  { %1768 = shalt.err (!%p1765_p5)
}
  0x47   :  { %115 = dma.hbm_to_vmem [thread:$0]  %s2527_s8, 16, %s113_s30, [#allocation19]  }
  0x48   :  { %s2055_s28 = smov [#allocation21]   ;;  %s2056_s3 = smov [#allocation24]  }
  0x49   :  { %s134_s29 = sshll.u32 %s2055_s28, 4  ;;  %s156_s4 = sshll.u32 %s2056_s3, 4  ;;  %s135_s29 = int_to_ptr.vmem [resolvable:$true] %s134_s29  ;;  %s157_s4 = int_to_ptr.vmem [resolvable:$true] %s156_s4 }
  0x4a   :  { %s1777_s24 = scalar_lea.vmem %s135_s29, 16  ;;  %s1781_s0 = scalar_lea.vmem %s135_s29, 32 }
  0x4b   :  { %p1778_p6 = scmp.ne.s32.totalorder %s135_s29, %s1777_s24  ;;  %p1782_p7 = scmp.lt.s32.totalorder %s135_s29, %s135_s29 }
  0x4c   :  { %p1783_p8 = scmp.lt.s32.totalorder %s1781_s0, %s1777_s24 }
  0x4e   :  { %p1784_p9 = por %p1783_p8, %p1782_p7 }
  0x50   :  { %p1785_p10 = pnand %p1784_p9, %p1778_p6 }
  0x52   :  { %1788 = shalt.err (!%p1785_p10)
}
  0x53   :  { %137 = dma.hbm_to_vmem [thread:$0]  %s2529_s10, 16, %s135_s29, [#allocation22]  }
  0x54   :  { %s1797_s1 = scalar_lea.vmem %s157_s4, 16  ;;  %s1801_s8 = scalar_lea.vmem %s157_s4, 32 }
  0x55   :  { %p1798_p11 = scmp.ne.s32.totalorder %s157_s4, %s1797_s1  ;;  %p1802_p12 = scmp.lt.s32.totalorder %s157_s4, %s157_s4 }
  0x56   :  { %p1803_p13 = scmp.lt.s32.totalorder %s1801_s8, %s1797_s1 }
  0x58   :  { %p1804_p0 = por %p1803_p13, %p1802_p12 }
  0x5a   :  { %p1805_p1 = pnand %p1804_p0, %p1798_p11 }
  0x5c   :  { %1808 = shalt.err (!%p1805_p1)
}
  0x5d   :  { %159 = dma.hbm_to_vmem [thread:$0]  %s2531_s12, 16, %s157_s4, [#allocation25]  }
  0x5e   :  { %s2057_s14 = smov [#allocation27]   ;;  %s2058_s6 = smov [#allocation9]  }
  0x5f   :  { %s180_s2 = sshll.u32 %s2057_s14, 4  ;;  %s51_s7 = sshll.u32 %s2058_s6, 4  ;;  %s181_s2 = int_to_ptr.vmem [resolvable:$true] %s180_s2  ;;  %s52_s7 = int_to_ptr.vmem [resolvable:$true] %s51_s7 }
  0x60   :  { %s1817_s28 = scalar_lea.vmem %s181_s2, 16  ;;  %s1821_s10 = scalar_lea.vmem %s181_s2, 32 }
  0x61   :  { %p1818_p2 = scmp.ne.s32.totalorder %s181_s2, %s1817_s28  ;;  %p1822_p3 = scmp.lt.s32.totalorder %s181_s2, %s181_s2 }
  0x62   :  { %p1823_p4 = scmp.lt.s32.totalorder %s1821_s10, %s1817_s28 }
  0x64   :  { %p1824_p5 = por %p1823_p4, %p1822_p3 }
  0x66   :  { %p1825_p6 = pnand %p1824_p5, %p1818_p2 }
  0x68   :  { %1828 = shalt.err (!%p1825_p6)
}
  0x69   :  { %183 = dma.hbm_to_vmem [thread:$0]  %s2534_s16, 16, %s181_s2, [#allocation28]  }
  0x6a   :  { %s1837_s24 = scalar_lea.vmem %s52_s7, 64  ;;  %p1842_p8 = scmp.lt.s32.totalorder %s52_s7, %s52_s7 }
  0x6b   :  { %p1838_p7 = scmp.ne.s32.totalorder %s52_s7, %s1837_s24  ;;  %p1843_p9 = scmp.lt.s32.totalorder %s1837_s24, %s1837_s24 }
  0x6d   :  { %p1844_p10 = por %p1843_p9, %p1842_p8 }
  0x6f   :  { %p1845_p11 = pnand %p1844_p10, %p1838_p7 }
  0x71   :  { %1848 = shalt.err (!%p1845_p11)
}
  0x72   :  { %s2059_s12 = smov 32   ;;  %s2060_s4 = smov 2  }
  0x73   :  { %s2558_s5 = sld [smem:[#allocation45_spill]]  ;;  %s2061_s1 = smov [#allocation14]  }
  0x74   :  { %s76_s8 = sshll.u32 %s2061_s1, 4  ;;  %s2062_s16 = smov [#allocation17]   ;;  %s77_s8 = int_to_ptr.vmem [resolvable:$true] %s76_s8 }
  0x75   :  { %s99_s30 = sshll.u32 %s2062_s16, 4  ;;  %s1857_s26 = scalar_lea.vmem %s77_s8, 32  ;;  %s100_s30 = int_to_ptr.vmem [resolvable:$true] %s99_s30 }
  0x76   :  { %p1858_p12 = scmp.ne.s32.totalorder %s77_s8, %s1857_s26  ;;  %p1862_p13 = scmp.lt.s32.totalorder %s77_s8, %s77_s8 }
  0x77   :  { %p1863_p0 = scmp.lt.s32.totalorder %s1857_s26, %s1857_s26 }
  0x79   :  { %57 = dma.hbm_to_vmem [thread:$0]  %s2558_s5, 64, %s52_s7, [#allocation10], %s2059_s12, %s2059_s12, %s2060_s4  }
  0x7a   :  { %p1864_p1 = por %p1863_p0, %p1862_p13 }
  0x7c   :  { %p1865_p2 = pnand %p1864_p1, %p1858_p12 }
  0x7e   :  { %1868 = shalt.err (!%p1865_p2)
}
  0x7f   :  { %s2559_s6 = sld [smem:[#allocation47_spill]]  ;;  %s1877_s28 = scalar_lea.vmem %s100_s30, 512 }
  0x80   :  { %p1878_p3 = scmp.ne.s32.totalorder %s100_s30, %s1877_s28  ;;  %p1882_p4 = scmp.lt.s32.totalorder %s100_s30, %s100_s30 }
  0x81   :  { %p1883_p5 = scmp.lt.s32.totalorder %s1877_s28, %s1877_s28 }
  0x83   :  { %p1884_p6 = por %p1883_p5, %p1882_p4 }
  0x85   :  { %79 = dma.hbm_to_vmem [thread:$0]  %s2559_s6, 32, %s77_s8, [#allocation13]  }
  0x86   :  { %p1885_p7 = pnand %p1884_p6, %p1878_p3 }
  0x88   :  { %1888 = shalt.err (!%p1885_p7)
}
  0x89   :  { %s2560_s29 = sld [smem:[#allocation51_spill]]  ;;  %s2063_s3 = smov [#allocation20]  }
  0x8a   :  { %s121_s24 = sshll.u32 %s2063_s3, 4  ;;  %s2064_s0 = smov [#allocation23]   ;;  %s122_s24 = int_to_ptr.vmem [resolvable:$true] %s121_s24 }
  0x8b   :  { %s143_s25 = sshll.u32 %s2064_s0, 4  ;;  %s1897_s5 = scalar_lea.vmem %s122_s24, 512  ;;  %s144_s25 = int_to_ptr.vmem [resolvable:$true] %s143_s25 }
  0x8c   :  { %p1898_p8 = scmp.ne.s32.totalorder %s122_s24, %s1897_s5  ;;  %p1902_p9 = scmp.lt.s32.totalorder %s122_s24, %s122_s24 }
  0x8d   :  { %p1903_p10 = scmp.lt.s32.totalorder %s1897_s5, %s1897_s5 }
  0x8f   :  { %105 = dma.hbm_to_vmem [thread:$0]  %s2560_s29, 512, %s100_s30, [#allocation16], %s2051_s17, %s2051_s17, %s2052_s27  }
  0x90   :  { %p1904_p11 = por %p1903_p10, %p1902_p9 }
  0x92   :  { %p1905_p12 = pnand %p1904_p11, %p1898_p8 }
  0x94   :  { %1908 = shalt.err (!%p1905_p12)
}
  0x95   :  { %127 = dma.hbm_to_vmem [thread:$0]  %s2528_s9, 512, %s122_s24, [#allocation19], %s2051_s17, %s2051_s17, %s2052_s27  }
  0x96   :  { %s1917_s16 = scalar_lea.vmem %s144_s25, 512  ;;  %p1922_p0 = scmp.lt.s32.totalorder %s144_s25, %s144_s25 }
  0x97   :  { %p1918_p13 = scmp.ne.s32.totalorder %s144_s25, %s1917_s16  ;;  %p1923_p1 = scmp.lt.s32.totalorder %s1917_s16, %s1917_s16 }
  0x99   :  { %p1924_p2 = por %p1923_p1, %p1922_p0 }
  0x9b   :  { %p1925_p3 = pnand %p1924_p2, %p1918_p13 }
  0x9d   :  { %1928 = shalt.err (!%p1925_p3)
}
  0x9e   :  { %149 = dma.hbm_to_vmem [thread:$0]  %s2530_s11, 512, %s144_s25, [#allocation22], %s2051_s17, %s2051_s17, %s2052_s27  }
  0x9f   :  { %s2065_s14 = smov [#allocation26]   ;;  %s2066_s6 = smov [#allocation29]  }
  0xa0   :  { %s166_s2 = sshll.u32 %s2065_s14, 4  ;;  %s192_s9 = sshll.u32 %s2066_s6, 4  ;;  %s167_s2 = int_to_ptr.vmem [resolvable:$true] %s166_s2  ;;  %s193_s9 = int_to_ptr.vmem [resolvable:$true] %s192_s9 }
  0xa1   :  { %s1937_s28 = scalar_lea.vmem %s167_s2, 16  ;;  %s1941_s7 = scalar_lea.vmem %s167_s2, 32 }
  0xa2   :  { %p1938_p4 = scmp.ne.s32.totalorder %s167_s2, %s1937_s28  ;;  %p1942_p5 = scmp.lt.s32.totalorder %s167_s2, %s167_s2 }
  0xa3   :  { %p1943_p6 = scmp.lt.s32.totalorder %s1941_s7, %s1937_s28 }
  0xa5   :  { %p1944_p7 = por %p1943_p6, %p1942_p5 }
  0xa7   :  { %p1945_p8 = pnand %p1944_p7, %p1938_p4 }
  0xa9   :  { %1948 = shalt.err (!%p1945_p8)
}
  0xaa   :  { %169 = dma.hbm_to_vmem [thread:$0]  %s2532_s13, 16, %s167_s2, [#allocation25]  }
  0xab   :  { %s1957_s3 = scalar_lea.vmem %s193_s9, 16  ;;  %s1961_s11 = scalar_lea.vmem %s193_s9, 32 }
  0xac   :  { %p1958_p9 = scmp.ne.s32.totalorder %s193_s9, %s1957_s3  ;;  %p1962_p10 = scmp.lt.s32.totalorder %s193_s9, %s193_s9 }
  0xad   :  { %p1963_p11 = scmp.lt.s32.totalorder %s1961_s11, %s1957_s3 }
  0xaf   :  { %p1964_p12 = por %p1963_p11, %p1962_p10 }
  0xb1   :  { %p1965_p13 = pnand %p1964_p12, %p1958_p9 }
  0xb3   :  { %1968 = shalt.err (!%p1965_p13)
}
  0xb4   :  { %195 = dma.hbm_to_vmem [thread:$0]  %s2536_s18, 16, %s193_s9, [#allocation28]  }
  0xb5   :  { %2031 = dma.done.wait [#allocation10], 64  }
  0xb6   :  { %2032 = vsyncadd [#allocation10], 4294967232 }
  0xb7   :  { %2033 = dma.done.wait [#allocation13], 288  }
  0xb8   :  { %2034 = vsyncadd [#allocation13], 4294967008 }
  0xb9   :  { %2035 = dma.done.wait [#allocation16], 528  }
  0xba   :  { %2036 = vsyncadd [#allocation16], 4294966768 }
  0xbb   :  { %2037 = dma.done.wait [#allocation19], 528  }
  0xbc   :  { %2038 = vsyncadd [#allocation19], 4294966768 }
  0xbd   :  { %2039 = dma.done.wait [#allocation22], 528  }
  0xbe   :  { %2040 = vsyncadd [#allocation22], 4294966768 }
  0xbf   :  { %2041 = dma.done.wait [#allocation25], 32  }
  0xc0   :  { %2042 = vsyncadd [#allocation25], 4294967264 }
  0xc1   :  { %2043 = dma.done.wait [#allocation28], 32  }
  0xc2   :  { %2044 = vsyncadd [#allocation28], 4294967264  ;;  %s2561_s0 = sld [smem:[#allocation49_spill]]  ;;  %v243_v4 = vld [vmem:[#allocation12] sm:$0xff]  ;;  %vm262_vm0 = vcmask 523264   ;;  %vm445_vm1 = vcmask 254976   ;;  %v448_v28 = vlaneseq }
  0xc3   :  { %v245_v5 = vmax.f32 %v243_v4, 0.0  ;;  %v444_v7 = vld [vmem:[#allocation9 + $0x2] sm:$0x3]  ;;  %v352_v8 = vld [vmem:[#allocation17 + $0x18] sm:$0xff]  ;;  %v2067_v16 = vmov 0.0   ;;  %vm2068_vm2 = vmmov 0  }
  0xc4   :  { %447 = vst.msk [vmem:[#allocation4 + $0x2] sm:$0x3] %vm445_vm1, %v444_v7  ;;  %1529 = vmatprep.subr.mxu1 %v352_v8  ;;  %v244_v12 = vld [vmem:[#allocation12 + $0x8] sm:$0xff]  ;;  %v556_v19 = vld [vmem:[#allocation20 + $0x8] sm:$0xff]  ;;  %v555_v20 = vld [vmem:[#allocation20] sm:$0xff]  ;;  %vm344_vm3 = vcmask 261120  }
  0xc5   :  { %1526 = vmatprep.mubr.msk.f32.mxu0 %vm262_vm0, %v245_v5  ;;  %1530 = vmatpush3.msra.mxu1 %v352_v8  ;;  %v246_v14 = vmax.f32 %v244_v12, 0.0  ;;  %v558_v15 = vld [vmem:[#allocation20 + $0x18] sm:$0xff]  ;;  %v557_v17 = vld [vmem:[#allocation20 + $0x10] sm:$0xff]  ;;  %v350_v23 = vld [vmem:[#allocation17 + $0x8] sm:$0xff]  ;;  %s450_s10 = sld [smem:[#allocation7]]  ;;  %v2298_v30 = vand.u32 127, %v448_v28 }
  0xc6   :  { %v351_v22 = vld [vmem:[#allocation17 + $0x10] sm:$0xff]  ;;  %v349_v24 = vld [vmem:[#allocation17] sm:$0xff]  ;;  %s1424_s29 = sld [smem:[#allocation7 + $0x1]]  ;;  %vm460_vm6 = vcmask 1040384   ;;  %vm462_vm7 = vcmask 517120   ;;  %v2069_v59 = vmov 0  }
  0xc7   :  { %1531 = vmatprep.subr.mxu1 %v351_v22  ;;  %v644_v25 = vld [vmem:[#allocation23 + $0x18] sm:$0xff]  ;;  %v643_v26 = vld [vmem:[#allocation23 + $0x10] sm:$0xff]  ;;  %v642_v27 = vld [vmem:[#allocation23 + $0x8] sm:$0xff]  ;;  %s2562_s17 = sld [smem:[#allocation48_spill]]  ;;  %1675 = vset.pattern.permute.xlu1 %v2069_v59  ;;  %v2070_v60 = vmov 1966171168  }
  0xc8   :  { %v254_v1 = vld [vmem:[%s2561_s0 + $0x38] sm:$0xff]  ;;  %v253_v2 = vld [vmem:[%s2561_s0 + $0x30] sm:$0xff]  ;;  %v252_v3 = vld [vmem:[%s2561_s0 + $0x28] sm:$0xff]  ;;  %1532 = vmatpush3.msra.mxu1 %v351_v22  ;;  %1676 = vset.pattern.permute.xlu0 %v2069_v59  ;;  %v727_v61 = vunpack.c.l.s4 %v2070_v60  ;;  %vm802_vm8 = vcmask 1041409   ;;  %vm806_vm10 = vcmask 58368   ;;  %vm841_vm11 = vcmask 64512  }
  0xc9   :  { %1510 = vmatprep.subr.mxu0 %v254_v1  ;;  %v251_v6 = vld [vmem:[%s2561_s0 + $0x20] sm:$0xff]  ;;  %v250_v9 = vld [vmem:[%s2561_s0 + $0x18] sm:$0xff]  ;;  %v249_v10 = vld [vmem:[%s2561_s0 + $0x10] sm:$0xff]  ;;  %1533 = vmatprep.subr.mxu1 %v350_v23  ;;  %s2071_s9 = smov 64   ;;  %vm1019_vm12 = vcmask 785408   ;;  %s2563_s7 = sld [smem:[#allocation52_spill]] }
  0xca   :  { %1511 = vmatpush3.msra.mxu0 %v254_v1  ;;  %v248_v11 = vld [vmem:[%s2561_s0 + $0x8] sm:$0xff]  ;;  %v247_v13 = vld [vmem:[%s2561_s0] sm:$0xff]  ;;  %1534 = vmatpush3.msra.mxu1 %v350_v23  ;;  %v1417_v36 = vld [vmem:[#allocation15] ss:$0 sm:$0xff]  ;;  %v728_v0 = vunpack.c.0.s8 %v727_v61  ;;  %v730_v1 = vshrl.u32 %v448_v28, 7  ;;  %s2072_s3 = smov 96  }
  0xcb   :  { %1512 = vmatprep.subr.mxu0 %v253_v2  ;;  %v553_v18 = vld [vmem:[#allocation4 + $0x2] sm:$0x3]  ;;  %1535 = vmatprep.subr.mxu1 %v349_v24  ;;  %v451_v31 = vstv %s450_s10  ;;  %v1427_v44 = vld [vmem:[#allocation21] ss:$0 sm:$0xff]  ;;  %v1432_v58 = vld [vmem:[#allocation8] ss:$0 sm:$0xff] }
  0xcc   :  { %1513 = vmatpush3.msra.mxu0 %v253_v2  ;;  %v554_v21 = vmax.f32 %v553_v18, 0.0  ;;  %1536 = vmatpush3.msra.mxu1 %v349_v24  ;;  %v641_v29 = vld [vmem:[#allocation23] sm:$0xff]  ;;  %vm452_vm4 = vcmp.eq.s32.totalorder %v2298_v30, %v451_v31  ;;  %v456_v32 = vstv %s1424_s29  ;;  %v1420_v62 = vld [vmem:[#allocation18] ss:$0 sm:$0xff]  ;;  %v1010_v59 = vld [vmem:[%s2533_s15 + $0x50] sm:$0xff] }
  0xcd   :  { %1514 = vmatprep.subr.mxu0 %v252_v3  ;;  %1540 = vmatprep.subr.mxu1 %v2067_v16  ;;  %v1423_v33 = vsel %vm452_vm4, 1.0, %v2067_v16  ;;  %vm457_vm5 = vcmp.eq.s32.totalorder %v2298_v30, %v456_v32  ;;  %v472_v43 = vld [vmem:[%s2562_s17 + $0x38] sm:$0xff]  ;;  %v471_v46 = vld [vmem:[%s2562_s17 + $0x30] sm:$0xff]  ;;  %v470_v49 = vld [vmem:[%s2562_s17 + $0x28] sm:$0xff]  ;;  %v796_v32 = vsub.s32 %v2298_v30, %v730_v1 }
  0xce   :  { %1515 = vmatpush3.msra.mxu0 %v252_v3  ;;  %v1425_v34 = vsel %vm457_vm5, 1.0, %v2067_v16  ;;  %v469_v51 = vld [vmem:[%s2562_s17 + $0x20] sm:$0xff]  ;;  %v468_v52 = vld [vmem:[%s2562_s17 + $0x18] sm:$0xff]  ;;  %v467_v53 = vld [vmem:[%s2562_s17 + $0x10] sm:$0xff]  ;;  %784 = vperm.xlu1 %1675, %v1432_v58  }
  0xcf   :  { %1516 = vmatprep.subr.mxu0 %v251_v6  ;;  %v461_v35 = vsel %vm460_vm6, %v1423_v33, %v1425_v34  ;;  %v466_v54 = vld [vmem:[%s2562_s17 + $0x8] sm:$0xff]  ;;  %v465_v55 = vld [vmem:[%s2562_s17] sm:$0xff]  ;;  %v1011_v58 = vld [vmem:[%s2533_s15 + $0x58] sm:$0xff] }
  0xd0   :  { %1517 = vmatpush3.msra.mxu0 %v251_v6  ;;  %463 = vst.msk [vmem:[#allocation5] sm:$0x3] %vm462_vm7, %v461_v35  ;;  %v1429_v5 = vld [vmem:[#allocation24] ss:$0 sm:$0xff]  ;;  %v2353_v6 = vsub.s32 %v728_v0, %v730_v1  ;;  %v1431_v22 = vld [vmem:[#allocation26] ss:$0 sm:$0xff] }
  0xd1   :  { %1518 = vmatprep.subr.mxu0 %v250_v9  ;;  %v551_v35 = vld [vmem:[#allocation14] sm:$0x3]  ;;  %v1009_v60 = vld [vmem:[%s2533_s15 + $0x48] sm:$0xff]  ;;  %v1008_v61 = vld [vmem:[%s2533_s15 + $0x40] sm:$0xff] }
  0xd2   :  { %1519 = vmatpush3.msra.mxu0 %v250_v9  ;;  %vm789_vm9 = vcmp.eq.f32.partialorder %v551_v35, 0.0  ;;  %v1005_v0 = vld [vmem:[%s2533_s15 + $0x28] sm:$0xff]  ;;  %v1135_v35 = vld [vmem:[%s2563_s7 + $0x20] sm:$0xff] }
  0xd3   :  { %1520 = vmatprep.subr.mxu0 %v249_v10 }
  0xd4   :  { %1521 = vmatpush3.msra.mxu0 %v249_v10 }
  0xd5   :  { %1522 = vmatprep.subr.mxu0 %v248_v11 }
  0xd6   :  { %1523 = vmatpush3.msra.mxu0 %v248_v11  ;;  %v750_v11 = vsub.s32 0, %v730_v1  ;;  %v1004_v1 = vld [vmem:[%s2533_s15 + $0x20] sm:$0xff] }
  0xd7   :  { %1524 = vmatprep.subr.mxu0 %v247_v13  ;;  %v464_v56 = vld [vmem:[#allocation5] sm:$0x3] }
  0xd8   :  { %1525 = vmatpush3.msra.mxu0 %v247_v13 }
  0xd9   :  { %1527 = vmatmul.mubr.msk.f32.vlgmr.msra.gmra.mxu0 %vm262_vm0, %v246_v14  ;;  %1559 = vmatprep.subr.mxu0 %v2067_v16 }
  0xda   :  { %1560 = vmatpush3.msra.mxu0 %v558_v15  ;;  %1567 = vmatprep.mubr.msk.f32.mxu0 %vm2068_vm2, %v2067_v16 }
  0xdb   :  { %1561 = vmatprep.subr.mxu0 %v2067_v16 }
  0xdc   :  { %1562 = vmatpush3.msra.mxu0 %v557_v17 }
  0xdd   :  { %1563 = vmatprep.subr.mxu0 %v2067_v16 }
  0xde   :  { %1564 = vmatpush3.msra.mxu0 %v556_v19 }
  0xdf   :  { %1565 = vmatprep.subr.mxu0 %v2067_v16 }
  0xe0   :  { %1566 = vmatpush3.msra.mxu0 %v555_v20 }
  0xe1   :  { %1568 = vmatmul.mubr.msk.f32.vlgmr.msra.gmra.mxu0 %vm344_vm3, %v554_v21  ;;  %1570 = vmatprep.subr.mxu0 %v2067_v16 }
  0xe2   :  { %1578 = vmatprep.mubr.msk.f32.mxu0 %vm2068_vm2, %v2067_v16  ;;  %1571 = vmatpush3.msra.mxu0 %v644_v25 }
  0xe3   :  { %1572 = vmatprep.subr.mxu0 %v2067_v16 }
  0xe4   :  { %1573 = vmatpush3.msra.mxu0 %v643_v26 }
  0xe5   :  { %1574 = vmatprep.subr.mxu0 %v2067_v16 }
  0xe6   :  { %1575 = vmatpush3.msra.mxu0 %v642_v27 }
  0xe7   :  { %1576 = vmatprep.subr.mxu0 %v2067_v16 }
  0xe8   :  { %1577 = vmatpush3.msra.mxu0 %v641_v29 }
  0xe9   :  { %1591 = vmatprep.subr.mxu0 %v2067_v16 }
 0x149   :  { %v785_v29 = vpop.permute.xlu1 %784 }
 0x199   :  { %v1528_v37 = vpop.f32.mrf.mxu0 }
 0x19a   :  { %v341_v38 = vadd.f32 %v1528_v37, %v1417_v36 }
 0x19b   :  { %v335_v39 = vpop.f32.mrf.mxu0 }
 0x19c   :  { %346 = vst.msk [vmem:[#allocation2 + $0x8] sm:$0xff] %vm344_vm3, %v341_v38  ;;  %v336_v40 = vadd.f32 %v1417_v36, %v335_v39  ;;  %v348_v42 = vmax.f32 %v341_v38, 0.0 }
 0x19e   :  { %345 = vst.msk [vmem:[#allocation2] sm:$0xff] %vm344_vm3, %v336_v40  ;;  %v347_v41 = vmax.f32 %v336_v40, 0.0 }
 0x1a0   :  { %1537 = vmatprep.mubr.msk.f32.mxu1 %vm344_vm3, %v347_v41 }
 0x1a1   :  { %1538 = vmatmul.mubr.msk.f32.vlgmr.msra.gmra.mxu1 %vm344_vm3, %v348_v42  ;;  %v636_v45 = vpop.f32.mrf.mxu0 }
 0x1a2   :  { %1541 = vmatpush3.msra.mxu1 %v472_v43  ;;  %v637_v47 = vadd.f32 %v1427_v44, %v636_v45  ;;  %1556 = vmatprep.mubr.msk.f32.mxu1 %vm2068_vm2, %v2067_v16 }
 0x1a3   :  { %1542 = vmatprep.subr.mxu1 %v2067_v16  ;;  %v1569_v48 = vpop.f32.mrf.mxu0 }
 0x1a4   :  { %v640_v50 = vmax.f32 %v637_v47, 0.0  ;;  %1543 = vmatpush3.msra.mxu1 %v471_v46 }
 0x1a5   :  { %1544 = vmatprep.subr.mxu1 %v2067_v16  ;;  %v547_v57 = vld [vmem:[#allocation2] sm:$0xff] }
 0x1a6   :  { %1545 = vmatpush3.msra.mxu1 %v470_v49  ;;  %1579 = vmatmul.mubr.msk.f32.vlgmr.msra.gmra.mxu0 %vm344_vm3, %v640_v50 }
 0x1a7   :  { %1546 = vmatprep.subr.mxu1 %v2067_v16  ;;  %1615 = vmatprep.mubr.msk.f32.mxu0 %vm2068_vm2, %v2067_v16 }
 0x1a8   :  { %1547 = vmatpush3.msra.mxu1 %v469_v51  ;;  %1592 = vmatpush3.msra.mxu0 %v1011_v58 }
 0x1a9   :  { %1548 = vmatprep.subr.mxu1 %v2067_v16  ;;  %1593 = vmatprep.subr.mxu0 %v2067_v16 }
 0x1aa   :  { %1549 = vmatpush3.msra.mxu1 %v468_v52  ;;  %1594 = vmatpush3.msra.mxu0 %v1010_v59 }
 0x1ab   :  { %1550 = vmatprep.subr.mxu1 %v2067_v16  ;;  %1595 = vmatprep.subr.mxu0 %v2067_v16 }
 0x1ac   :  { %1551 = vmatpush3.msra.mxu1 %v467_v53  ;;  %1596 = vmatpush3.msra.mxu0 %v1009_v60 }
 0x1ad   :  { %1552 = vmatprep.subr.mxu1 %v2067_v16  ;;  %1597 = vmatprep.subr.mxu0 %v2067_v16 }
 0x1ae   :  { %1553 = vmatpush3.msra.mxu1 %v466_v54  ;;  %1598 = vmatpush3.msra.mxu0 %v1008_v61 }
 0x1af   :  { %1554 = vmatprep.subr.mxu1 %v2067_v16  ;;  %1599 = vmatprep.subr.mxu0 %v2067_v16 }
 0x1b0   :  { %1555 = vmatpush3.msra.mxu1 %v465_v55  ;;  %v548_v55 = vld [vmem:[#allocation2 + $0x8] sm:$0xff] }
 0x1b1   :  { %1581 = vmatprep.subr.mxu1 %v2067_v16  ;;  %1557 = vmatmul.mubr.msk.f32.vlgmr.msra.gmra.mxu1 %vm262_vm0, %v464_v56 }
 0x1b2   :  { %1582 = vmatpush3.msra.mxu1 %v547_v57  ;;  %1583 = vmatprep.mubr.msk.f32.mxu1 %vm2068_vm2, %v2067_v16  ;;  %v443_v57 = vld [vmem:[#allocation9] sm:$0x3] }
 0x1b3   :  { %1586 = vmatprep.subr.mxu1 %v2067_v16  ;;  %446 = vst.msk [vmem:[#allocation4] sm:$0x3] %vm445_vm1, %v443_v57 }
 0x261   :  { %v1539_v63 = vpop.f32.mrf.mxu1 }
 0x262   :  { %v438_v2 = vadd.f32 %v1539_v63, %v1420_v62  ;;  %v1006_v63 = vld [vmem:[%s2533_s15 + $0x30] sm:$0xff] }
 0x263   :  { %v432_v3 = vpop.f32.mrf.mxu1 }
 0x264   :  { %442 = vst.msk [vmem:[#allocation3 + $0x8] sm:$0xff] %vm344_vm3, %v438_v2  ;;  %v433_v4 = vadd.f32 %v1420_v62, %v432_v3  ;;  %v1007_v62 = vld [vmem:[%s2533_s15 + $0x38] sm:$0xff]  ;;  %v1002_v3 = vld [vmem:[%s2533_s15 + $0x10] sm:$0xff] }
 0x265   :  { %1600 = vmatpush3.msra.mxu0 %v1007_v62  ;;  %v1003_v2 = vld [vmem:[%s2533_s15 + $0x18] sm:$0xff] }
 0x266   :  { %441 = vst.msk [vmem:[#allocation3] sm:$0xff] %vm344_vm3, %v433_v4  ;;  %v721_v7 = vpop.f32.mrf.mxu0  ;;  %1601 = vmatprep.subr.mxu0 %v2067_v16  ;;  %v1001_v4 = vld [vmem:[%s2533_s15 + $0x8] sm:$0xff]  ;;  %v1248_v62 = vld [vmem:[%s2537_s19 + $0x18] sm:$0xff] }
 0x267   :  { %v722_v8 = vadd.f32 %v1429_v5, %v721_v7  ;;  %1602 = vmatpush3.msra.mxu0 %v1006_v63  ;;  %v1000_v5 = vld [vmem:[%s2533_s15] sm:$0xff]  ;;  %v1247_v63 = vld [vmem:[%s2537_s19 + $0x10] sm:$0xff] }
 0x268   :  { %v1580_v9 = vpop.f32.mrf.mxu0  ;;  %1603 = vmatprep.subr.mxu0 %v2067_v16 }
 0x269   :  { %v732_v10 = vrot.slane %v722_v8, %v2353_v6  ;;  %1604 = vmatpush3.msra.mxu0 %v1005_v0  ;;  %v1246_v0 = vld [vmem:[%s2537_s19 + $0x8] sm:$0xff] }
 0x26a   :  { %1605 = vmatprep.subr.mxu0 %v2067_v16 }
 0x26b   :  { %v733_v12 = vcombine.high %v732_v10, %v732_v10  ;;  %v740_v13 = vrot.slane %v732_v10, %v2353_v6  ;;  %v550_v20 = vld [vmem:[#allocation3 + $0x8] sm:$0xff]  ;;  %1606 = vmatpush3.msra.mxu0 %v1004_v1  ;;  %v1245_v1 = vld [vmem:[%s2537_s19] sm:$0xff] }
 0x26c   :  { %1607 = vmatprep.subr.mxu0 %v2067_v16 }
 0x26d   :  { %v549_v14 = vld [vmem:[#allocation3] sm:$0xff]  ;;  %v747_v15 = vrot.slane %v733_v12, %v2353_v6  ;;  %v751_v17 = vrot.slane %v740_v13, %v750_v11  ;;  %1608 = vmatpush3.msra.mxu0 %v1003_v2  ;;  %v994_v12 = vld [vmem:[#allocation4] sm:$0x3] }
 0x26e   :  { %1609 = vmatprep.subr.mxu0 %v2067_v16 }
 0x26f   :  { %v755_v18 = vrot.slane %v747_v15, %v750_v11  ;;  %v758_v19 = vadd.f32 %v751_v17, %v549_v14  ;;  %1610 = vmatpush3.msra.mxu0 %v1002_v3 }
 0x270   :  { %1611 = vmatprep.subr.mxu0 %v2067_v16 }
 0x271   :  { %v759_v21 = vadd.f32 %v755_v18, %v550_v20  ;;  %1677 = vtanh.f32 %v758_v19  ;;  %v2365_v47 = vpop.f32.mrf.mxu1  ;;  %1612 = vmatpush3.msra.mxu0 %v1001_v4  ;;  %v1435_v18 = vld [vmem:[#allocation27] ss:$0 sm:$0xff] }
 0x272   :  { %1613 = vmatprep.subr.mxu0 %v2067_v16 }
 0x273   :  { %1679 = vtanh.f32 %v759_v21  ;;  %v1558_v48 = vpop.f32.mrf.mxu1  ;;  %1614 = vmatpush3.msra.mxu0 %v1000_v5 }
 0x27e   :  { %v1678_v23 = vpop.eup %1677 }
 0x27f   :  { %v769_v24 = vmul.f32 %v1678_v23, %v1431_v22 }
 0x280   :  { %v1680_v25 = vpop.eup %1679 }
 0x281   :  { %v771_v26 = vsel %vm344_vm3, %v769_v24, 0.0  ;;  %v770_v27 = vmul.f32 %v1680_v25, %v1431_v22 }
 0x282   :  { %772 = vadd.xlane.f32.xlu0 %v771_v26 }
 0x283   :  { %v774_v28 = vsel %vm344_vm3, %v770_v27, 0.0 }
 0x286   :  { %775 = vadd.xlane.f32.xlu0 %v774_v28 }
 0x30b   :  { %v773_v31 = vpop.xlane.xlu0 %772 }
 0x30c   :  { %v787_v33 = vadd.f32 %v785_v29, %v773_v31 }
 0x30e   :  { %v797_v37 = vrot.slane %v787_v33, %v796_v32  ;;  %v1137_v33 = vld [vmem:[%s2563_s7 + $0x30] sm:$0xff] }
 0x30f   :  { %v776_v34 = vpop.xlane.xlu0 %775 }
 0x310   :  { %v788_v36 = vadd.f32 %v785_v29, %v776_v34  ;;  %v1136_v34 = vld [vmem:[%s2563_s7 + $0x28] sm:$0xff] }
 0x312   :  { %v801_v38 = vrot.slane %v788_v36, %v796_v32  ;;  %v1138_v32 = vld [vmem:[%s2563_s7 + $0x38] sm:$0xff] }
 0x313   :  { %v1134_v36 = vld [vmem:[%s2563_s7 + $0x18] sm:$0xff] }
 0x314   :  { %v803_v39 = vsel %vm802_vm8, %v801_v38, %v797_v37  ;;  %v1133_v37 = vld [vmem:[%s2563_s7 + $0x10] sm:$0xff]  ;;  %v1132_v38 = vld [vmem:[%s2563_s7 + $0x8] sm:$0xff] }
 0x315   :  { %v805_v40 = vsel %vm789_vm9, -inf, %v803_v39 }
 0x316   :  { %v807_v41 = vsel %vm806_vm10, %v805_v40, -inf }
 0x317   :  { %808 = vmax.xlane.f32.xlu1 %v807_v41 }
 0x3a0   :  { %v809_v42 = vpop.xlane.xlu1 %808 }
 0x3a1   :  { %v810_v43 = vsub.f32 %v805_v40, %v809_v42  ;;  %v1131_v40 = vld [vmem:[%s2563_s7] sm:$0xff] }
 0x3a3   :  { %v811_v44 = vmul.f32 1.442695, %v810_v43 }
 0x3a5   :  { %1681 = vpow2.f32 %v811_v44 }
 0x3b2   :  { %v1682_v45 = vpop.eup %1681 }
 0x3b3   :  { %v813_v46 = vsel %vm806_vm10, %v1682_v45, 0.0 }
 0x3b4   :  { %814 = vadd.xlane.f32.xlu0 %v813_v46  ;;  %v1121_v46 = vld [vmem:[#allocation4 + $0x2] sm:$0x3] }
 0x43d   :  { %v815_v49 = vpop.xlane.xlu0 %814 }
 0x43e   :  { %1683 = vrcp.f32 %v815_v49 }
 0x44b   :  { %v1684_v50 = vpop.eup %1683 }
 0x44c   :  { %v817_v51 = vmul.f32 %v1684_v50, %v1682_v45  ;;  %v1438_v50 = vld [vmem:[#allocation29] ss:$0 sm:$0xff] }
 0x44e   :  { %1342 = vst.msk [vmem:[#allocation33] sm:$0x3] %vm806_vm10, %v817_v51  ;;  %v825_v52 = vrot.slane %v817_v51, %v2353_v6 }
 0x450   :  { %v833_v53 = vrot.slane %v825_v52, %v2353_v6  ;;  %v826_v54 = vcombine.high %v825_v52, %v825_v52 }
 0x452   :  { %1584 = vmatmul.mubr.msk.f32.vlgmr.msra.gmra.mxu1 %vm841_vm11, %v833_v53  ;;  %v840_v56 = vrot.slane %v826_v54, %v2353_v6 }
 0x453   :  { %1587 = vmatpush3.msra.mxu1 %v548_v55  ;;  %1588 = vmatprep.mubr.msk.f32.mxu1 %vm2068_vm2, %v2067_v16 }
 0x454   :  { %1618 = vmatprep.subr.mxu1 %v2067_v16 }
 0x456   :  { %1589 = vmatmul.mubr.msk.f32.vlgmr.msra.gmra.mxu1 %vm841_vm11, %v840_v56 }
 0x457   :  { %1634 = vmatprep.mubr.msk.f32.mxu1 %vm2068_vm2, %v2067_v16  ;;  %1619 = vmatpush3.msra.mxu1 %v1138_v32 }
 0x458   :  { %1620 = vmatprep.subr.mxu1 %v2067_v16 }
 0x459   :  { %1621 = vmatpush3.msra.mxu1 %v1137_v33 }
 0x45a   :  { %1622 = vmatprep.subr.mxu1 %v2067_v16 }
 0x45b   :  { %1623 = vmatpush3.msra.mxu1 %v1136_v34 }
 0x45c   :  { %1624 = vmatprep.subr.mxu1 %v2067_v16 }
 0x45d   :  { %1625 = vmatpush3.msra.mxu1 %v1135_v35 }
 0x45e   :  { %1626 = vmatprep.subr.mxu1 %v2067_v16 }
 0x45f   :  { %1627 = vmatpush3.msra.mxu1 %v1134_v36 }
 0x460   :  { %1628 = vmatprep.subr.mxu1 %v2067_v16 }
 0x461   :  { %1629 = vmatpush3.msra.mxu1 %v1133_v37 }
 0x462   :  { %1630 = vmatprep.subr.mxu1 %v2067_v16 }
 0x463   :  { %1631 = vmatpush3.msra.mxu1 %v1132_v38 }
 0x464   :  { %1632 = vmatprep.subr.mxu1 %v2067_v16 }
 0x465   :  { %1633 = vmatpush3.msra.mxu1 %v1131_v40 }
 0x466   :  { %1637 = vmatprep.subr.mxu1 %v2067_v16 }
 0x512   :  { %v910_v6 = vpop.f32.mrf.mxu1 }
 0x514   :  { %v1585_v7 = vpop.f32.mrf.mxu1 }
 0x516   :  { %v982_v8 = vpop.f32.mrf.mxu1 }
 0x517   :  { %v988_v9 = vrot.slane %v982_v8, 7 }
 0x518   :  { %v1590_v10 = vpop.f32.mrf.mxu1 }
 0x519   :  { %v989_v11 = vsel %vm802_vm8, %v988_v9, %v910_v6  ;;  %v1441_v10 = vld [vmem:[%s2538_s20] ss:$0 sm:$0xff]  ;;  %s2073_s20 = smov [#allocation30]  }
 0x51a   :  { %990 = vrot.lane.b32.xlu0 %v989_v11, %s2059_s12  ;;  %s1373_s10 = sshll.u32 %s2073_s20, 4  ;;  %s1374_s10 = int_to_ptr.vmem [resolvable:$true] %s1373_s10 }
 0x51b   :  { %s1969_s29 = scalar_lea.vmem %s1374_s10, 32  ;;  %p1974_p1 = scmp.lt.s32.totalorder %s1374_s10, %s1374_s10 }
 0x51c   :  { %p1970_p0 = scmp.ne.s32.totalorder %s1374_s10, %s1969_s29  ;;  %p1975_p2 = scmp.lt.s32.totalorder %s1969_s29, %s1969_s29 }
 0x51e   :  { %996 = vrot.lane.b32.xlu0 %v994_v12, %s2071_s9  ;;  %p1976_p3 = por %p1975_p2, %p1974_p1 }
 0x520   :  { %p1977_p4 = pnand %p1976_p3, %p1970_p0 }
 0x58c   :  { %v991_v13 = vpop.permute.xlu0 %990 }
 0x58d   :  { %v993_v14 = vsel %vm344_vm3, %v2365_v47, %v991_v13 }
 0x590   :  { %v997_v15 = vpop.permute.xlu0 %996 }
 0x591   :  { %v999_v17 = vsel %vm262_vm0, %v993_v14, %v997_v15 }
 0x592   :  { %1616 = vmatmul.mubr.msk.f32.vlgmr.msra.gmra.mxu0 %vm1019_vm12, %v999_v17 }
 0x652   :  { %v1089_v19 = vpop.f32.mrf.mxu0 }
 0x653   :  { %v1090_v20 = vadd.f32 %v1435_v18, %v1089_v19 }
 0x654   :  { %v1617_v21 = vpop.f32.mrf.mxu0 }
 0x655   :  { %1100 = vrot.lane.b32.xlu0 %v1090_v20, %s2059_s12  ;;  %v1437_v22 = vmul.f32 -1.442695, %v1090_v20 }
 0x657   :  { %1685 = vpow2.f32 %v1437_v22 }
 0x664   :  { %v1686_v23 = vpop.eup %1685 }
 0x665   :  { %v1096_v24 = vadd.f32 1.0, %v1686_v23 }
 0x667   :  { %1687 = vrcp.f32 %v1096_v24 }
 0x674   :  { %v1688_v25 = vpop.eup %1687 }
 0x675   :  { %v1110_v41 = vsub.f32 1.0, %v1688_v25 }
 0x6c7   :  { %v1101_v26 = vpop.permute.xlu0 %1100 }
 0x6c8   :  { %v1103_v27 = vmul.f32 %v1688_v25, %v1101_v26 }
 0x6ca   :  { %1105 = vrot.lane.b32.xlu1 %v1103_v27, %s2071_s9 }
 0x73c   :  { %v1106_v28 = vpop.permute.xlu1 %1105 }
 0x73d   :  { %v1108_v29 = vadd.f32 %v1106_v28, %v1090_v20 }
 0x73f   :  { %1689 = vtanh.f32 %v1108_v29 }
 0x74c   :  { %v1690_v31 = vpop.eup %1689 }
 0x74d   :  { %1112 = vrot.lane.b32.xlu0 %v1690_v31, %s2072_s3 }
 0x751   :  { %1116 = vrot.lane.b32.xlu0 %v994_v12, %s2059_s12 }
 0x7bf   :  { %v1113_v39 = vpop.permute.xlu0 %1112 }
 0x7c0   :  { %v1115_v43 = vmul.f32 %v1113_v39, %v1110_v41 }
 0x7c3   :  { %v1117_v42 = vpop.permute.xlu0 %1116 }
 0x7c4   :  { %v1119_v44 = vmul.f32 %v1688_v25, %v1117_v42 }
 0x7c6   :  { %v1120_v45 = vadd.f32 %v1119_v44, %v1115_v43 }
 0x7c8   :  { %1123 = vrot.lane.b32.xlu0 %v1120_v45, %s2072_s3 }
 0x7cc   :  { %1127 = vrot.lane.b32.xlu0 %v1121_v46, %s2059_s12 }
 0x83a   :  { %v1124_v47 = vpop.permute.xlu0 %1123 }
 0x83b   :  { %1336 = vst.msk [vmem:[#allocation4] sm:$0x3] %vm445_vm1, %v1124_v47  ;;  %1338 = vst.msk [vmem:[#allocation31] sm:$0x3] %vm445_vm1, %v1124_v47 }
 0x83e   :  { %v1128_v48 = vpop.permute.xlu0 %1127 }
 0x83f   :  { %v1130_v49 = vsel %vm344_vm3, %v1124_v47, %v1128_v48 }
 0x840   :  { %1635 = vmatmul.mubr.msk.f32.vlgmr.msra.gmra.mxu1 %vm262_vm0, %v1130_v49 }
 0x841   :  { %1645 = vmatprep.mubr.msk.f32.mxu1 %vm2068_vm2, %v2067_v16  ;;  %1638 = vmatpush3.msra.mxu1 %v1248_v62 }
 0x842   :  { %1639 = vmatprep.subr.mxu1 %v2067_v16 }
 0x843   :  { %1640 = vmatpush3.msra.mxu1 %v1247_v63 }
 0x844   :  { %1641 = vmatprep.subr.mxu1 %v2067_v16 }
 0x845   :  { %1642 = vmatpush3.msra.mxu1 %v1246_v0 }
 0x846   :  { %1643 = vmatprep.subr.mxu1 %v2067_v16 }
 0x847   :  { %1644 = vmatpush3.msra.mxu1 %v1245_v1 }
 0x900   :  { %v1215_v51 = vpop.f32.mrf.mxu1 }
 0x901   :  { %v1216_v52 = vadd.f32 %v1438_v50, %v1215_v51 }
 0x902   :  { %v1636_v53 = vpop.f32.mrf.mxu1 }
 0x903   :  { %1226 = vrot.lane.b32.xlu1 %v1216_v52, %s2059_s12  ;;  %v1440_v54 = vmul.f32 -1.442695, %v1216_v52 }
 0x905   :  { %1691 = vpow2.f32 %v1440_v54 }
 0x912   :  { %v1692_v55 = vpop.eup %1691 }
 0x913   :  { %v1222_v56 = vadd.f32 1.0, %v1692_v55 }
 0x915   :  { %1693 = vrcp.f32 %v1222_v56 }
 0x922   :  { %v1694_v57 = vpop.eup %1693 }
 0x923   :  { %v1236_v3 = vsub.f32 1.0, %v1694_v57  ;;  %v1242_v5 = vmul.f32 %v1694_v57, %v1128_v48 }
 0x975   :  { %v1227_v58 = vpop.permute.xlu1 %1226 }
 0x976   :  { %v1229_v59 = vmul.f32 %v1694_v57, %v1227_v58 }
 0x978   :  { %1231 = vrot.lane.b32.xlu0 %v1229_v59, %s2071_s9 }
 0x9ea   :  { %v1232_v60 = vpop.permute.xlu0 %1231 }
 0x9eb   :  { %v1234_v61 = vadd.f32 %v1232_v60, %v1216_v52 }
 0x9ed   :  { %1695 = vtanh.f32 %v1234_v61 }
 0x9fa   :  { %v1696_v2 = vpop.eup %1695 }
 0x9fb   :  { %1238 = vrot.lane.b32.xlu1 %v1696_v2, %s2072_s3 }
 0xa6d   :  { %v1239_v4 = vpop.permute.xlu1 %1238 }
 0xa6e   :  { %v1241_v6 = vmul.f32 %v1239_v4, %v1236_v3 }
 0xa70   :  { %v1243_v7 = vadd.f32 %v1242_v5, %v1241_v6 }
 0xa72   :  { %v1244_v8 = vmax.f32 %v1243_v7, 0.0 }
 0xa74   :  { %1257 = vrot.lane.b32.xlu0 %v1244_v8, %s2072_s3 }
 0xae6   :  { %v1258_v9 = vpop.permute.xlu0 %1257 }
 0xae7   :  { %1646 = vmatmul.mubr.msk.f32.vlgmr.msra.gmra.mxu1 %vm344_vm3, %v1258_v9 }
 0xba7   :  { %v1327_v11 = vpop.f32.mrf.mxu1 }
 0xba8   :  { %v1328_v12 = vadd.f32 %v1441_v10, %v1327_v11 }
 0xba9   :  { %v1647_v13 = vpop.f32.mrf.mxu1 }
 0xbaa   :  { %1341 = vst.msk [vmem:[#allocation30] sm:$0x3] %vm462_vm7, %v1328_v12  ;;  %v1343_v14 = vsel %vm462_vm7, %v1328_v12, -inf }
 0xbab   :  { %1344 = vmax.xlane.f32.xlu1 %v1343_v14 }
 0xc34   :  { %v1345_v15 = vpop.xlane.xlu1 %1344 }
 0xc35   :  { %vm1346_vm13 = vcmp.eq.f32.partialorder %v1328_v12, %v1345_v15 }
 0xc36   :  { %v1347_v17 = vsel %vm1346_vm13, %v2298_v30, 64 }
 0xc37   :  { %v1348_v18 = vsel %vm462_vm7, %v1347_v17, 2147483647 }
 0xc38   :  { %v1350_v19 = vshra.s32 %v1348_v18, 16  ;;  %v1349_v21 = vand.u32 65535, %v1348_v18 }
 0xc3a   :  { %v1352_v20 = vcvt.s32.f32 %v1350_v19  ;;  %v1351_v23 = vcvt.s32.f32 %v1349_v21 }
 0xc3c   :  { %1353 = vmin.xlane.f32.xlu0 %v1352_v20 }
 0xcc5   :  { %v1354_v22 = vpop.xlane.xlu0 %1353 }
 0xcc6   :  { %vm1355_vm14 = vcmp.eq.f32.partialorder %v1352_v20, %v1354_v22 }
 0xcc7   :  { %v1356_v24 = vsel %vm1355_vm14, %v1351_v23, inf }
 0xcc8   :  { %1357 = vmin.xlane.f32.xlu0 %v1356_v24 }
 0xcc9   :  { %1980 = shalt.err (!%p1977_p4)
}
 0xcca   :  { %1376 = dma.vmem_to_hbm [thread:$0]  %s1374_s10, 32, %s2539_s21, [#allocation11]   ;;  %v1360_v25 = vcvt.f32.s32 %v1354_v22 }
 0xccb   :  { %s2074_s27 = smov [#allocation31]   ;;  %s2075_s24 = smov [#allocation33]  }
 0xccc   :  { %s1382_s13 = sshll.u32 %s2074_s27, 4  ;;  %v1361_v27 = vshll.u32 %v1360_v25, 16  ;;  %s1395_s0 = sshll.u32 %s2075_s24, 4  ;;  %s1383_s13 = int_to_ptr.vmem [resolvable:$true] %s1382_s13  ;;  %s1396_s0 = int_to_ptr.vmem [resolvable:$true] %s1395_s0 }
 0xccd   :  { %s1989_s21 = scalar_lea.vmem %s1383_s13, 64  ;;  %p1994_p6 = scmp.lt.s32.totalorder %s1383_s13, %s1383_s13 }
 0xcce   :  { %p1990_p5 = scmp.ne.s32.totalorder %s1383_s13, %s1989_s21  ;;  %p1995_p7 = scmp.lt.s32.totalorder %s1989_s21, %s1989_s21 }
 0xcd0   :  { %p1996_p8 = por %p1995_p7, %p1994_p6 }
 0xcd2   :  { %p1997_p9 = pnand %p1996_p8, %p1990_p5 }
 0xcde   :  { %1332 = vrot.lane.b32.xlu0 %v1243_v7, %s2072_s3 }
 0xd51   :  { %v1358_v26 = vpop.xlane.xlu0 %1357 }
 0xd52   :  { %v1359_v28 = vcvt.f32.s32 %v1358_v26 }
 0xd54   :  { %v1362_v29 = vadd.s32 %v1361_v27, %v1359_v28 }
 0xd55   :  { %v1333_v31 = vpop.permute.xlu0 %1332 }
 0xd56   :  { %vm1363_vm15 = vcmp.eq.s32.totalorder %v2298_v30, %v1362_v29  ;;  %1337 = vst.msk [vmem:[#allocation4 + $0x2] sm:$0x3] %vm445_vm1, %v1333_v31  ;;  %1339 = vst.msk [vmem:[#allocation31 + $0x2] sm:$0x3] %vm445_vm1, %v1333_v31 }
 0xd57   :  { %v1443_v32 = vsel %vm1363_vm15, 1.0, %v2067_v16 }
 0xd58   :  { %2000 = shalt.err (!%p1997_p9)
}
 0xd59   :  { %1388 = dma.vmem_to_hbm [thread:$0]  %s1383_s13, 64, %s2540_s22, [#allocation32], %s2059_s12, %s2059_s12, %s2060_s4   ;;  %1366 = vst.msk [vmem:[#allocation5] sm:$0x3] %vm462_vm7, %v1443_v32 }
 0xd5a   :  { %s2009_s18 = scalar_lea.vmem %s1396_s0, 32  ;;  %p2014_p11 = scmp.lt.s32.totalorder %s1396_s0, %s1396_s0 }
 0xd5b   :  { %p2010_p10 = scmp.ne.s32.totalorder %s1396_s0, %s2009_s18  ;;  %p2015_p12 = scmp.lt.s32.totalorder %s2009_s18, %s2009_s18 }
 0xd5d   :  { %p2016_p13 = por %p2015_p12, %p2014_p11 }
 0xd5f   :  { %p2017_p0 = pnand %p2016_p13, %p2010_p10 }
 0xd61   :  { %2020 = shalt.err (!%p2017_p0)
}
 0xd62   :  { %1398 = dma.vmem_to_hbm [thread:$0]  %s1396_s0, 32, %s2541_s23, [#allocation32]  }
 0xd63   :  { %2045 = dma.done.wait [#allocation11], 32  }
 0xd64   :  { %2046 = vsyncadd [#allocation11], 4294967264 }
 0xd65   :  { %2047 = dma.done.wait [#allocation32], 96  }
 0xd66   :  { %2048 = vsyncadd [#allocation32], 4294967200 }
 0xd67   :  { %1408 = vsyncpa [#allocation10], 1 }
 0xd68   :  { %1409 = vsyncpa [#allocation13], 1 }
 0xd69   :  { %1410 = vsyncpa [#allocation16], 1 }
 0xd6a   :  { %1411 = vsyncpa [#allocation19], 1 }
 0xd6b   :  { %1412 = vsyncpa [#allocation22], 1 }
 0xd6c   :  { %1413 = vsyncpa [#allocation25], 1 }
 0xd6d   :  { %1414 = vsyncpa [#allocation28], 1 }
 0xd6e   :  { %1415 = vsyncpa [#allocation11], 1 }
 0xd6f   :  { %1416 = vsyncpa [#allocation32], 1 }

</bundles_post_ra>
